<compile_context>
chip_gen: v7x
topology: tpu7x:2x2x1
jax: 0.10.0
libtpu: 0.0.40
codegen_flags: <defaults>
</compile_context>

<pallas_src>
import functools
import math

import jax
import jax.numpy as jnp
from jax.experimental import pallas as pl
from jax.experimental.pallas import tpu as pltpu

VMEM = pl.BlockSpec(memory_space=pltpu.MemorySpace.VMEM)
SMEM = pl.BlockSpec(memory_space=pltpu.MemorySpace.SMEM)


# ----------------------------- Pallas kernels ------------------------------

def _score_lane_dense(p_f32, h_f32):
    # TopKPooling score: tanh((h . p) / ||p||), emitted as [1, N] (lane-dense).
    inv_norm = jax.lax.rsqrt(jnp.sum(p_f32 * p_f32))
    s = jax.lax.dot_general(
        p_f32, h_f32,
        dimension_numbers=(((1,), (1,)), ((), ())),
        preferred_element_type=jnp.float32)                  # [1, N]
    return jnp.tanh(s * inv_norm)


def _gin_layer_kernel(eps_ref, a_ref, x_ref, w1_ref, b1_ref, w2_ref, b2_ref,
                      p_ref, h_ref, s_ref):
    # GINConv(nn=(Linear(F,128), Linear(128,128)), learnable eps) -> ReLU,
    # plus the TopKPooling-1 tanh score, in one kernel.
    # TODO(synk): spec passes nn as a tuple of two Linears (no inner ReLU);
    # if the intended nn is Sequential(Linear, ReLU, Linear), add ReLU here.
    x = x_ref[...]                                           # [N, F] f32
    agg = jnp.dot(a_ref[...], x,
                  preferred_element_type=jnp.float32)        # [N, F] f32
    z = (1.0 + eps_ref[0]) * x + agg                         # eps from SMEM
    h = jnp.dot(z, w1_ref[...],
                preferred_element_type=jnp.float32) + b1_ref[...]
    h = jnp.dot(h, w2_ref[...],
                preferred_element_type=jnp.float32) + b2_ref[...]
    h = jnp.maximum(h, 0.0)                                  # [N, 128] f32
    h_ref[...] = h
    s_ref[...] = _score_lane_dense(p_ref[...], h)            # [1, N]


def _graph_layer_kernel(a_ref, x_ref, wcat_ref, b_ref, p_ref, h_ref, s_ref):
    # GraphConv(128,128,'add') -> ReLU + TopKPooling score, one kernel.
    # out = [A@x | x] @ [W_rel ; W_root] + b   (single K=256 MXU matmul).
    x = x_ref[...]                                           # [N, 128] f32
    agg = jnp.dot(a_ref[...], x,
                  preferred_element_type=jnp.float32)        # [N, 128] f32
    cat = jnp.concatenate([agg, x], axis=1)                  # [N, 256] f32
    h = jnp.dot(cat, wcat_ref[...],
                preferred_element_type=jnp.float32) + b_ref[...]
    h = jnp.maximum(h, 0.0)
    h_ref[...] = h
    s_ref[...] = _score_lane_dense(p_ref[...], h)            # [1, N]


def _tail_kernel(x1_ref, x2_ref, x3_ref,
                 w1_ref, b1_ref, w2_ref, b2_ref, w3_ref, b3_ref,
                 o_ref, *, num_graphs, ks):
    # Fused epilogue: three [gmp | gap] readouts (contiguous per-graph blocks),
    # x1 + x2 + x3, then Linear->ReLU->Linear->ReLU->Linear->log_softmax.
    c = x1_ref.shape[1]
    rows = []
    for g in range(num_graphs):                              # static unroll
        gmax_sum = jnp.zeros((1, c), jnp.float32)
        gmean_sum = jnp.zeros((1, c), jnp.float32)
        for xr, k in zip((x1_ref, x2_ref, x3_ref), ks):
            xs = xr[g * k:(g + 1) * k, :]                    # [k, C] f32
            gmax_sum = gmax_sum + jnp.max(xs, axis=0, keepdims=True)
            gmean_sum = gmean_sum + jnp.sum(xs, axis=0, keepdims=True) * (1.0 / k)
        rows.append(jnp.concatenate([gmax_sum, gmean_sum], axis=1))  # [1, 2C]

    h = jnp.concatenate(rows, axis=0)                        # [G, 2C] f32
    h = jnp.maximum(jnp.dot(h, w1_ref[...],
                            preferred_element_type=jnp.float32) + b1_ref[...], 0.0)
    # TODO(synk): F.dropout(p=0.5, training=self.training) omitted — inference mode.
    h = jnp.maximum(jnp.dot(h, w2_ref[...],
                            preferred_element_type=jnp.float32) + b2_ref[...], 0.0)
    logits = jnp.dot(h, w3_ref[...],
                     preferred_element_type=jnp.float32) + b3_ref[...]
    z = logits - jnp.max(logits, axis=-1, keepdims=True)
    o_ref[...] = z - jnp.log(jnp.sum(jnp.exp(z), axis=-1, keepdims=True))


# ------------------------------- wrappers -----------------------------------

def gin_layer(eps, a, x, w1, b1, w2, b2, p):
    n = x.shape[0]
    c = w2.shape[1]
    return pl.pallas_call(
        _gin_layer_kernel,
        out_shape=(jax.ShapeDtypeStruct((n, c), jnp.float32),
                   jax.ShapeDtypeStruct((1, n), jnp.float32)),
        in_specs=[SMEM] + [VMEM] * 7,
        out_specs=(VMEM, VMEM),
    )(eps, a, x, w1, b1, w2, b2, p)


def graph_layer(a, x, wcat, b, p):
    n = x.shape[0]
    c = b.shape[1]
    return pl.pallas_call(
        _graph_layer_kernel,
        out_shape=(jax.ShapeDtypeStruct((n, c), jnp.float32),
                   jax.ShapeDtypeStruct((1, n), jnp.float32)),
        in_specs=[VMEM] * 5,
        out_specs=(VMEM, VMEM),
    )(a, x, wcat, b, p)


def tail_head(x1, x2, x3, ks, num_graphs, params):
    num_classes = params["lin3_w"].shape[1]
    kernel = functools.partial(_tail_kernel, num_graphs=num_graphs, ks=ks)
    return pl.pallas_call(
        kernel,
        out_shape=jax.ShapeDtypeStruct((num_graphs, num_classes), jnp.float32),
        in_specs=[VMEM] * 9,
        out_specs=VMEM,
    )(x1, x2, x3,
      params["lin1_w"], params["lin1_b"],
      params["lin2_w"], params["lin2_b"],
      params["lin3_w"], params["lin3_b"])


# ------------------------------- JAX glue -----------------------------------

def topk_select(x, a, score_row, num_graphs, nodes_per_graph, ratio=0.8):
    """TopKPooling: per-graph top-k by precomputed tanh score (shape [1, N]),
    gate x by the score (fused into the gather), relabel the adjacency.
    Assumes contiguous per-graph node layout.  Returns (x_new, a_new, k)."""
    score = score_row[0]                                     # [N]
    k = int(math.ceil(ratio * nodes_per_graph))
    per_graph = score.reshape(num_graphs, nodes_per_graph)
    _, idx = jax.lax.top_k(per_graph, k)                     # [G, k] local idx
    offsets = (jnp.arange(num_graphs, dtype=jnp.int32) * nodes_per_graph)[:, None]
    perm = (idx.astype(jnp.int32) + offsets).reshape(-1)     # [G*k] global idx
    x_new = x[perm] * score[perm][:, None]                   # gather + gate
    a_new = a[perm][:, perm]                                 # filter + relabel
    return x_new, a_new, k


def net_forward(params, x, a, num_graphs, nodes_per_graph):
    # conv1(+relu)+score, pool1
    h, s = gin_layer(params["eps"], a, x,
                     params["gin_w1"], params["gin_b1"],
                     params["gin_w2"], params["gin_b2"],
                     params["pool1_p"])
    x1_feat, a, k1 = topk_select(h, a, s, num_graphs, nodes_per_graph)

    # conv2(+relu)+score, pool2
    h, s = graph_layer(a, x1_feat, params["c2_wcat"], params["c2_b"],
                       params["pool2_p"])
    x2_feat, a, k2 = topk_select(h, a, s, num_graphs, k1)

    # conv3(+relu)+score, pool3
    h, s = graph_layer(a, x2_feat, params["c3_wcat"], params["c3_b"],
                       params["pool3_p"])
    x3_feat, a, k3 = topk_select(h, a, s, num_graphs, k2)

    # fused readouts + sum + MLP head + log_softmax
    return tail_head(x1_feat, x2_feat, x3_feat, (k1, k2, k3), num_graphs, params)


# ------------------------------ parameters ----------------------------------

def init_params(key, num_features, num_classes, hidden=128):
    ks = jax.random.split(key, 12)

    def nrm(k, shape, s=0.1):
        return (s * jax.random.normal(k, shape)).astype(jnp.float32)

    zf = lambda shape: jnp.zeros(shape, jnp.float32)

    c2_wrel = nrm(ks[5], (hidden, hidden))
    c2_wroot = nrm(ks[6], (hidden, hidden))
    c3_wrel = nrm(ks[7], (hidden, hidden))
    c3_wroot = nrm(ks[8], (hidden, hidden))
    return {
        # GINConv nn = (Linear(F,128), Linear(128,128)), eps learnable, init 0
        "gin_w1": nrm(ks[0], (num_features, hidden)), "gin_b1": zf((1, hidden)),
        "gin_w2": nrm(ks[1], (hidden, hidden)),       "gin_b2": zf((1, hidden)),
        "eps": jnp.zeros((1,), jnp.float32),                     # SMEM scalar
        # TopKPooling projection vectors, stored lane-dense [1, C] (f32)
        "pool1_p": nrm(ks[2], (1, hidden), 1.0),
        "pool2_p": nrm(ks[3], (1, hidden), 1.0),
        "pool3_p": nrm(ks[4], (1, hidden), 1.0),
        # GraphConv: stacked [W_rel ; W_root] -> single K=256 matmul
        "c2_wcat": jnp.concatenate([c2_wrel, c2_wroot], axis=0), "c2_b": zf((1, hidden)),
        "c3_wcat": jnp.concatenate([c3_wrel, c3_wroot], axis=0), "c3_b": zf((1, hidden)),
        # MLP head
        "lin1_w": nrm(ks[9], (2 * hidden, hidden)),  "lin1_b": zf((1, hidden)),
        "lin2_w": nrm(ks[10], (hidden, 64)),         "lin2_b": zf((1, 64)),
        "lin3_w": nrm(ks[11], (64, num_classes)),    "lin3_b": zf((1, num_classes)),
    }


def make_example_graph(key, num_graphs, nodes_per_graph, num_features):
    n = num_graphs * nodes_per_graph
    x = jax.random.normal(key, (n, num_features), dtype=jnp.float32)
    # each graph: bidirectional ring over its nodes
    offs = jnp.arange(num_graphs, dtype=jnp.int32)[:, None] * nodes_per_graph
    i = jnp.arange(nodes_per_graph, dtype=jnp.int32)[None, :]
    src = (offs + i).reshape(-1)
    dst = (offs + (i + 1) % nodes_per_graph).reshape(-1)
    a = jnp.zeros((n, n), jnp.float32)
    a = a.at[dst, src].add(1.0)
    a = a.at[src, dst].add(1.0)
    return x, a


# --------------------------------- main --------------------------------------

if __name__ == "__main__":
    NUM_FEATURES = 16
    NUM_CLASSES = 4
    NUM_GRAPHS = 2
    NODES_PER_GRAPH = 10

    key = jax.random.PRNGKey(0)
    k_param, k_x = jax.random.split(key)
    params = init_params(k_param, NUM_FEATURES, NUM_CLASSES)
    x, a = make_example_graph(k_x, NUM_GRAPHS, NODES_PER_GRAPH, NUM_FEATURES)

    fwd = jax.jit(functools.partial(net_forward,
                                    num_graphs=NUM_GRAPHS,
                                    nodes_per_graph=NODES_PER_GRAPH))
    out = jax.block_until_ready(fwd(params, x, a))

    assert out.shape == (NUM_GRAPHS, NUM_CLASSES)
    # log_softmax rows must exponentiate-sum to ~1
    assert jnp.allclose(jnp.sum(jnp.exp(out), axis=-1), 1.0, atol=1e-4)
    print("KERNEL_OK")
</pallas_src>

<mosaic_0001>
module attributes {stable_mosaic.version = 11 : i64} {
  func.func @_gin_layer_kernel(%arg0: memref<1xf32, #tpu.memory_space<smem>>, %arg1: memref<20x20xf32, #tpu.memory_space<vmem>>, %arg2: memref<20x16xf32, #tpu.memory_space<vmem>>, %arg3: memref<16x128xf32, #tpu.memory_space<vmem>>, %arg4: memref<1x128xf32, #tpu.memory_space<vmem>>, %arg5: memref<128x128xf32, #tpu.memory_space<vmem>>, %arg6: memref<1x128xf32, #tpu.memory_space<vmem>>, %arg7: memref<1x128xf32, #tpu.memory_space<vmem>>, %arg8: memref<20x128xf32, #tpu.memory_space<vmem>>, %arg9: memref<1x20xf32, #tpu.memory_space<vmem>>) attributes {dimension_semantics = [], scalar_prefetch = 0 : i64, scratch_operands = 0 : i64, tpu.core_type = #tpu.core_type<tc>} {
    %c0 = arith.constant 0 : index
    %c0_0 = arith.constant 0 : index
    %0 = vector.load %arg2[%c0, %c0_0] : memref<20x16xf32, #tpu.memory_space<vmem>>, vector<20x16xf32>
    %c0_1 = arith.constant 0 : index
    %c0_2 = arith.constant 0 : index
    %1 = vector.load %arg1[%c0_1, %c0_2] : memref<20x20xf32, #tpu.memory_space<vmem>>, vector<20x20xf32>
    %cst = arith.constant dense<0.000000e+00> : vector<20x16xf32>
    %2 = tpu.matmul %1, %0, %cst {dimension_numbers = #tpu.dot_dimension_numbers<[1], [0], [0], [1], [0, 0, 1, 1], [], []>} : vector<20x20xf32>, vector<20x16xf32>, vector<20x16xf32> -> vector<20x16xf32>
    %c0_3 = arith.constant 0 : index
    %3 = memref.load %arg0[%c0_3] : memref<1xf32, #tpu.memory_space<smem>>
    %cst_4 = arith.constant 1.000000e+00 : f32
    %4 = arith.addf %cst_4, %3 : f32
    %5 = vector.broadcast %4 : f32 to vector<20x16xf32>
    %6 = arith.mulf %5, %0 : vector<20x16xf32>
    %7 = arith.addf %6, %2 : vector<20x16xf32>
    %c0_5 = arith.constant 0 : index
    %c0_6 = arith.constant 0 : index
    %8 = vector.load %arg3[%c0_5, %c0_6] : memref<16x128xf32, #tpu.memory_space<vmem>>, vector<16x128xf32>
    %cst_7 = arith.constant dense<0.000000e+00> : vector<20x128xf32>
    %9 = tpu.matmul %7, %8, %cst_7 {dimension_numbers = #tpu.dot_dimension_numbers<[1], [0], [0], [1], [0, 0, 1, 1], [], []>} : vector<20x16xf32>, vector<16x128xf32>, vector<20x128xf32> -> vector<20x128xf32>
    %c0_8 = arith.constant 0 : index
    %c0_9 = arith.constant 0 : index
    %10 = vector.load %arg4[%c0_8, %c0_9] : memref<1x128xf32, #tpu.memory_space<vmem>>, vector<1x128xf32>
    %11 = vector.broadcast %10 : vector<1x128xf32> to vector<20x128xf32>
    %12 = arith.addf %9, %11 : vector<20x128xf32>
    %c0_10 = arith.constant 0 : index
    %c0_11 = arith.constant 0 : index
    %13 = vector.load %arg5[%c0_10, %c0_11] : memref<128x128xf32, #tpu.memory_space<vmem>>, vector<128x128xf32>
    %cst_12 = arith.constant dense<0.000000e+00> : vector<20x128xf32>
    %14 = tpu.matmul %12, %13, %cst_12 {dimension_numbers = #tpu.dot_dimension_numbers<[1], [0], [0], [1], [0, 0, 1, 1], [], []>} : vector<20x128xf32>, vector<128x128xf32>, vector<20x128xf32> -> vector<20x128xf32>
    %c0_13 = arith.constant 0 : index
    %c0_14 = arith.constant 0 : index
    %15 = vector.load %arg6[%c0_13, %c0_14] : memref<1x128xf32, #tpu.memory_space<vmem>>, vector<1x128xf32>
    %16 = vector.broadcast %15 : vector<1x128xf32> to vector<20x128xf32>
    %17 = arith.addf %14, %16 : vector<20x128xf32>
    %cst_15 = arith.constant 0.000000e+00 : f32
    %18 = vector.broadcast %cst_15 : f32 to vector<20x128xf32>
    %19 = arith.maximumf %17, %18 : vector<20x128xf32>
    %c0_16 = arith.constant 0 : index
    %c0_17 = arith.constant 0 : index
    %20 = vector.load %arg8[%c0_16, %c0_17] : memref<20x128xf32, #tpu.memory_space<vmem>>, vector<20x128xf32>
    tpu.vector_store %arg8[%c0_16, %c0_17], %19 {strides = array<i32>} : memref<20x128xf32, #tpu.memory_space<vmem>>, vector<20x128xf32>,
    %c0_18 = arith.constant 0 : index
    %c0_19 = arith.constant 0 : index
    %21 = vector.load %arg7[%c0_18, %c0_19] : memref<1x128xf32, #tpu.memory_space<vmem>>, vector<1x128xf32>
    %22 = arith.mulf %21, %21 : vector<1x128xf32>
    %23 = vector.shape_cast %22 : vector<1x128xf32> to vector<1x1x128xf32>
    %cst_20 = arith.constant dense<0.000000e+00> : vector<1xf32>
    %24 = vector.multi_reduction <add>, %23, %cst_20 [1, 2] : vector<1x1x128xf32> to vector<1xf32>
    %25 = vector.shape_cast %24 : vector<1xf32> to vector<1x1x1xf32>
    %26 = vector.extract %25[0, 0, 0] : f32 from vector<1x1x1xf32>
    %27 = math.rsqrt %26 : f32
    %cst_21 = arith.constant dense<0.000000e+00> : vector<1x20xf32>
    %28 = tpu.matmul %21, %19, %cst_21 {dimension_numbers = #tpu.dot_dimension_numbers<[1], [1], [0], [0], [0, 0, 1, 0], [], []>} : vector<1x128xf32>, vector<20x128xf32>, vector<1x20xf32> -> vector<1x20xf32>
    %29 = vector.broadcast %27 : f32 to vector<1x20xf32>
    %30 = arith.mulf %28, %29 : vector<1x20xf32>
    %31 = math.tanh %30 : vector<1x20xf32>
    %c0_22 = arith.constant 0 : index
    %c0_23 = arith.constant 0 : index
    %32 = vector.load %arg9[%c0_22, %c0_23] : memref<1x20xf32, #tpu.memory_space<vmem>>, vector<1x20xf32>
    tpu.vector_store %arg9[%c0_22, %c0_23], %31 {strides = array<i32>} : memref<1x20xf32, #tpu.memory_space<vmem>>, vector<1x20xf32>,
    return
  }
}

module attributes {stable_mosaic.version = 11 : i64} {
  func.func @_graph_layer_kernel(%arg0: memref<16x16xf32, #tpu.memory_space<vmem>>, %arg1: memref<16x128xf32, #tpu.memory_space<vmem>>, %arg2: memref<256x128xf32, #tpu.memory_space<vmem>>, %arg3: memref<1x128xf32, #tpu.memory_space<vmem>>, %arg4: memref<1x128xf32, #tpu.memory_space<vmem>>, %arg5: memref<16x128xf32, #tpu.memory_space<vmem>>, %arg6: memref<1x16xf32, #tpu.memory_space<vmem>>) attributes {dimension_semantics = [], scalar_prefetch = 0 : i64, scratch_operands = 0 : i64, tpu.core_type = #tpu.core_type<tc>} {
    %c0 = arith.constant 0 : index
    %c0_0 = arith.constant 0 : index
    %0 = vector.load %arg1[%c0, %c0_0] : memref<16x128xf32, #tpu.memory_space<vmem>>, vector<16x128xf32>
    %c0_1 = arith.constant 0 : index
    %c0_2 = arith.constant 0 : index
    %1 = vector.load %arg0[%c0_1, %c0_2] : memref<16x16xf32, #tpu.memory_space<vmem>>, vector<16x16xf32>
    %cst = arith.constant dense<0.000000e+00> : vector<16x128xf32>
    %2 = tpu.matmul %1, %0, %cst {dimension_numbers = #tpu.dot_dimension_numbers<[1], [0], [0], [1], [0, 0, 1, 1], [], []>} : vector<16x16xf32>, vector<16x128xf32>, vector<16x128xf32> -> vector<16x128xf32>
    %3 = tpu.concatenate %2, %0 in 1 : vector<16x128xf32>, vector<16x128xf32> -> vector<16x256xf32>
    %c0_3 = arith.constant 0 : index
    %c0_4 = arith.constant 0 : index
    %4 = vector.load %arg2[%c0_3, %c0_4] : memref<256x128xf32, #tpu.memory_space<vmem>>, vector<256x128xf32>
    %cst_5 = arith.constant dense<0.000000e+00> : vector<16x128xf32>
    %5 = tpu.matmul %3, %4, %cst_5 {dimension_numbers = #tpu.dot_dimension_numbers<[1], [0], [0], [1], [0, 0, 1, 1], [], []>} : vector<16x256xf32>, vector<256x128xf32>, vector<16x128xf32> -> vector<16x128xf32>
    %c0_6 = arith.constant 0 : index
    %c0_7 = arith.constant 0 : index
    %6 = vector.load %arg3[%c0_6, %c0_7] : memref<1x128xf32, #tpu.memory_space<vmem>>, vector<1x128xf32>
    %7 = vector.broadcast %6 : vector<1x128xf32> to vector<16x128xf32>
    %8 = arith.addf %5, %7 : vector<16x128xf32>
    %cst_8 = arith.constant 0.000000e+00 : f32
    %9 = vector.broadcast %cst_8 : f32 to vector<16x128xf32>
    %10 = arith.maximumf %8, %9 : vector<16x128xf32>
    %c0_9 = arith.constant 0 : index
    %c0_10 = arith.constant 0 : index
    %11 = vector.load %arg5[%c0_9, %c0_10] : memref<16x128xf32, #tpu.memory_space<vmem>>, vector<16x128xf32>
    tpu.vector_store %arg5[%c0_9, %c0_10], %10 {strides = array<i32>} : memref<16x128xf32, #tpu.memory_space<vmem>>, vector<16x128xf32>,
    %c0_11 = arith.constant 0 : index
    %c0_12 = arith.constant 0 : index
    %12 = vector.load %arg4[%c0_11, %c0_12] : memref<1x128xf32, #tpu.memory_space<vmem>>, vector<1x128xf32>
    %13 = arith.mulf %12, %12 : vector<1x128xf32>
    %14 = vector.shape_cast %13 : vector<1x128xf32> to vector<1x1x128xf32>
    %cst_13 = arith.constant dense<0.000000e+00> : vector<1xf32>
    %15 = vector.multi_reduction <add>, %14, %cst_13 [1, 2] : vector<1x1x128xf32> to vector<1xf32>
    %16 = vector.shape_cast %15 : vector<1xf32> to vector<1x1x1xf32>
    %17 = vector.extract %16[0, 0, 0] : f32 from vector<1x1x1xf32>
    %18 = math.rsqrt %17 : f32
    %cst_14 = arith.constant dense<0.000000e+00> : vector<1x16xf32>
    %19 = tpu.matmul %12, %10, %cst_14 {dimension_numbers = #tpu.dot_dimension_numbers<[1], [1], [0], [0], [0, 0, 1, 0], [], []>} : vector<1x128xf32>, vector<16x128xf32>, vector<1x16xf32> -> vector<1x16xf32>
    %20 = vector.broadcast %18 : f32 to vector<1x16xf32>
    %21 = arith.mulf %19, %20 : vector<1x16xf32>
    %22 = math.tanh %21 : vector<1x16xf32>
    %c0_15 = arith.constant 0 : index
    %c0_16 = arith.constant 0 : index
    %23 = vector.load %arg6[%c0_15, %c0_16] : memref<1x16xf32, #tpu.memory_space<vmem>>, vector<1x16xf32>
    tpu.vector_store %arg6[%c0_15, %c0_16], %22 {strides = array<i32>} : memref<1x16xf32, #tpu.memory_space<vmem>>, vector<1x16xf32>,
    return
  }
}

module attributes {stable_mosaic.version = 11 : i64} {
  func.func @_graph_layer_kernel(%arg0: memref<14x14xf32, #tpu.memory_space<vmem>>, %arg1: memref<14x128xf32, #tpu.memory_space<vmem>>, %arg2: memref<256x128xf32, #tpu.memory_space<vmem>>, %arg3: memref<1x128xf32, #tpu.memory_space<vmem>>, %arg4: memref<1x128xf32, #tpu.memory_space<vmem>>, %arg5: memref<14x128xf32, #tpu.memory_space<vmem>>, %arg6: memref<1x14xf32, #tpu.memory_space<vmem>>) attributes {dimension_semantics = [], scalar_prefetch = 0 : i64, scratch_operands = 0 : i64, tpu.core_type = #tpu.core_type<tc>} {
    %c0 = arith.constant 0 : index
    %c0_0 = arith.constant 0 : index
    %0 = vector.load %arg1[%c0, %c0_0] : memref<14x128xf32, #tpu.memory_space<vmem>>, vector<14x128xf32>
    %c0_1 = arith.constant 0 : index
    %c0_2 = arith.constant 0 : index
    %1 = vector.load %arg0[%c0_1, %c0_2] : memref<14x14xf32, #tpu.memory_space<vmem>>, vector<14x14xf32>
    %cst = arith.constant dense<0.000000e+00> : vector<14x128xf32>
    %2 = tpu.matmul %1, %0, %cst {dimension_numbers = #tpu.dot_dimension_numbers<[1], [0], [0], [1], [0, 0, 1, 1], [], []>} : vector<14x14xf32>, vector<14x128xf32>, vector<14x128xf32> -> vector<14x128xf32>
    %3 = tpu.concatenate %2, %0 in 1 : vector<14x128xf32>, vector<14x128xf32> -> vector<14x256xf32>
    %c0_3 = arith.constant 0 : index
    %c0_4 = arith.constant 0 : index
    %4 = vector.load %arg2[%c0_3, %c0_4] : memref<256x128xf32, #tpu.memory_space<vmem>>, vector<256x128xf32>
    %cst_5 = arith.constant dense<0.000000e+00> : vector<14x128xf32>
    %5 = tpu.matmul %3, %4, %cst_5 {dimension_numbers = #tpu.dot_dimension_numbers<[1], [0], [0], [1], [0, 0, 1, 1], [], []>} : vector<14x256xf32>, vector<256x128xf32>, vector<14x128xf32> -> vector<14x128xf32>
    %c0_6 = arith.constant 0 : index
    %c0_7 = arith.constant 0 : index
    %6 = vector.load %arg3[%c0_6, %c0_7] : memref<1x128xf32, #tpu.memory_space<vmem>>, vector<1x128xf32>
    %7 = vector.broadcast %6 : vector<1x128xf32> to vector<14x128xf32>
    %8 = arith.addf %5, %7 : vector<14x128xf32>
    %cst_8 = arith.constant 0.000000e+00 : f32
    %9 = vector.broadcast %cst_8 : f32 to vector<14x128xf32>
    %10 = arith.maximumf %8, %9 : vector<14x128xf32>
    %c0_9 = arith.constant 0 : index
    %c0_10 = arith.constant 0 : index
    %11 = vector.load %arg5[%c0_9, %c0_10] : memref<14x128xf32, #tpu.memory_space<vmem>>, vector<14x128xf32>
    tpu.vector_store %arg5[%c0_9, %c0_10], %10 {strides = array<i32>} : memref<14x128xf32, #tpu.memory_space<vmem>>, vector<14x128xf32>,
    %c0_11 = arith.constant 0 : index
    %c0_12 = arith.constant 0 : index
    %12 = vector.load %arg4[%c0_11, %c0_12] : memref<1x128xf32, #tpu.memory_space<vmem>>, vector<1x128xf32>
    %13 = arith.mulf %12, %12 : vector<1x128xf32>
    %14 = vector.shape_cast %13 : vector<1x128xf32> to vector<1x1x128xf32>
    %cst_13 = arith.constant dense<0.000000e+00> : vector<1xf32>
    %15 = vector.multi_reduction <add>, %14, %cst_13 [1, 2] : vector<1x1x128xf32> to vector<1xf32>
    %16 = vector.shape_cast %15 : vector<1xf32> to vector<1x1x1xf32>
    %17 = vector.extract %16[0, 0, 0] : f32 from vector<1x1x1xf32>
    %18 = math.rsqrt %17 : f32
    %cst_14 = arith.constant dense<0.000000e+00> : vector<1x14xf32>
    %19 = tpu.matmul %12, %10, %cst_14 {dimension_numbers = #tpu.dot_dimension_numbers<[1], [1], [0], [0], [0, 0, 1, 0], [], []>} : vector<1x128xf32>, vector<14x128xf32>, vector<1x14xf32> -> vector<1x14xf32>
    %20 = vector.broadcast %18 : f32 to vector<1x14xf32>
    %21 = arith.mulf %19, %20 : vector<1x14xf32>
    %22 = math.tanh %21 : vector<1x14xf32>
    %c0_15 = arith.constant 0 : index
    %c0_16 = arith.constant 0 : index
    %23 = vector.load %arg6[%c0_15, %c0_16] : memref<1x14xf32, #tpu.memory_space<vmem>>, vector<1x14xf32>
    tpu.vector_store %arg6[%c0_15, %c0_16], %22 {strides = array<i32>} : memref<1x14xf32, #tpu.memory_space<vmem>>, vector<1x14xf32>,
    return
  }
}

module attributes {stable_mosaic.version = 11 : i64} {
  func.func @_tail_kernel(%arg0: memref<16x128xf32, #tpu.memory_space<vmem>>, %arg1: memref<14x128xf32, #tpu.memory_space<vmem>>, %arg2: memref<12x128xf32, #tpu.memory_space<vmem>>, %arg3: memref<256x128xf32, #tpu.memory_space<vmem>>, %arg4: memref<1x128xf32, #tpu.memory_space<vmem>>, %arg5: memref<128x64xf32, #tpu.memory_space<vmem>>, %arg6: memref<1x64xf32, #tpu.memory_space<vmem>>, %arg7: memref<64x4xf32, #tpu.memory_space<vmem>>, %arg8: memref<1x4xf32, #tpu.memory_space<vmem>>, %arg9: memref<2x4xf32, #tpu.memory_space<vmem>>) attributes {dimension_semantics = [], scalar_prefetch = 0 : i64, scratch_operands = 0 : i64, tpu.core_type = #tpu.core_type<tc>} {
    %cst = arith.constant 0.000000e+00 : f32
    %0 = vector.broadcast %cst : f32 to vector<1x128xf32>
    %cst_0 = arith.constant 0.000000e+00 : f32
    %1 = vector.broadcast %cst_0 : f32 to vector<1x128xf32>
    %c0 = arith.constant 0 : index
    %c0_1 = arith.constant 0 : index
    %2 = vector.load %arg0[%c0, %c0_1] : memref<16x128xf32, #tpu.memory_space<vmem>>, vector<8x128xf32>
    %cst_2 = arith.constant dense<0xFF800000> : vector<128xf32>
    %3 = vector.multi_reduction <maximumf>, %2, %cst_2 [0] : vector<8x128xf32> to vector<128xf32>
    %4 = vector.shape_cast %3 : vector<128xf32> to vector<1x128xf32>
    %5 = arith.addf %0, %4 : vector<1x128xf32>
    %cst_3 = arith.constant dense<0.000000e+00> : vector<128xf32>
    %6 = vector.multi_reduction <add>, %2, %cst_3 [0] : vector<8x128xf32> to vector<128xf32>
    %7 = vector.shape_cast %6 : vector<128xf32> to vector<1x128xf32>
    %cst_4 = arith.constant 1.250000e-01 : f32
    %8 = vector.broadcast %cst_4 : f32 to vector<1x128xf32>
    %9 = arith.mulf %7, %8 : vector<1x128xf32>
    %10 = arith.addf %1, %9 : vector<1x128xf32>
    %c0_5 = arith.constant 0 : index
    %c0_6 = arith.constant 0 : index
    %11 = vector.load %arg1[%c0_5, %c0_6] : memref<14x128xf32, #tpu.memory_space<vmem>>, vector<7x128xf32>
    %cst_7 = arith.constant dense<0xFF800000> : vector<128xf32>
    %12 = vector.multi_reduction <maximumf>, %11, %cst_7 [0] : vector<7x128xf32> to vector<128xf32>
    %13 = vector.shape_cast %12 : vector<128xf32> to vector<1x128xf32>
    %14 = arith.addf %5, %13 : vector<1x128xf32>
    %cst_8 = arith.constant dense<0.000000e+00> : vector<128xf32>
    %15 = vector.multi_reduction <add>, %11, %cst_8 [0] : vector<7x128xf32> to vector<128xf32>
    %16 = vector.shape_cast %15 : vector<128xf32> to vector<1x128xf32>
    %cst_9 = arith.constant 0.142857149 : f32
    %17 = vector.broadcast %cst_9 : f32 to vector<1x128xf32>
    %18 = arith.mulf %16, %17 : vector<1x128xf32>
    %19 = arith.addf %10, %18 : vector<1x128xf32>
    %c0_10 = arith.constant 0 : index
    %c0_11 = arith.constant 0 : index
    %20 = vector.load %arg2[%c0_10, %c0_11] : memref<12x128xf32, #tpu.memory_space<vmem>>, vector<6x128xf32>
    %cst_12 = arith.constant dense<0xFF800000> : vector<128xf32>
    %21 = vector.multi_reduction <maximumf>, %20, %cst_12 [0] : vector<6x128xf32> to vector<128xf32>
    %22 = vector.shape_cast %21 : vector<128xf32> to vector<1x128xf32>
    %23 = arith.addf %14, %22 : vector<1x128xf32>
    %cst_13 = arith.constant dense<0.000000e+00> : vector<128xf32>
    %24 = vector.multi_reduction <add>, %20, %cst_13 [0] : vector<6x128xf32> to vector<128xf32>
    %25 = vector.shape_cast %24 : vector<128xf32> to vector<1x128xf32>
    %cst_14 = arith.constant 0.166666672 : f32
    %26 = vector.broadcast %cst_14 : f32 to vector<1x128xf32>
    %27 = arith.mulf %25, %26 : vector<1x128xf32>
    %28 = arith.addf %19, %27 : vector<1x128xf32>
    %29 = tpu.concatenate %23, %28 in 1 : vector<1x128xf32>, vector<1x128xf32> -> vector<1x256xf32>
    %cst_15 = arith.constant 0.000000e+00 : f32
    %30 = vector.broadcast %cst_15 : f32 to vector<1x128xf32>
    %cst_16 = arith.constant 0.000000e+00 : f32
    %31 = vector.broadcast %cst_16 : f32 to vector<1x128xf32>
    %c8 = arith.constant 8 : index
    %c0_17 = arith.constant 0 : index
    %32 = vector.load %arg0[%c8, %c0_17] : memref<16x128xf32, #tpu.memory_space<vmem>>, vector<8x128xf32>
    %cst_18 = arith.constant dense<0xFF800000> : vector<128xf32>
    %33 = vector.multi_reduction <maximumf>, %32, %cst_18 [0] : vector<8x128xf32> to vector<128xf32>
    %34 = vector.shape_cast %33 : vector<128xf32> to vector<1x128xf32>
    %35 = arith.addf %30, %34 : vector<1x128xf32>
    %cst_19 = arith.constant dense<0.000000e+00> : vector<128xf32>
    %36 = vector.multi_reduction <add>, %32, %cst_19 [0] : vector<8x128xf32> to vector<128xf32>
    %37 = vector.shape_cast %36 : vector<128xf32> to vector<1x128xf32>
    %cst_20 = arith.constant 1.250000e-01 : f32
    %38 = vector.broadcast %cst_20 : f32 to vector<1x128xf32>
    %39 = arith.mulf %37, %38 : vector<1x128xf32>
    %40 = arith.addf %31, %39 : vector<1x128xf32>
    %c7 = arith.constant 7 : index
    %c0_21 = arith.constant 0 : index
    %41 = vector.load %arg1[%c7, %c0_21] : memref<14x128xf32, #tpu.memory_space<vmem>>, vector<7x128xf32>
    %cst_22 = arith.constant dense<0xFF800000> : vector<128xf32>
    %42 = vector.multi_reduction <maximumf>, %41, %cst_22 [0] : vector<7x128xf32> to vector<128xf32>
    %43 = vector.shape_cast %42 : vector<128xf32> to vector<1x128xf32>
    %44 = arith.addf %35, %43 : vector<1x128xf32>
    %cst_23 = arith.constant dense<0.000000e+00> : vector<128xf32>
    %45 = vector.multi_reduction <add>, %41, %cst_23 [0] : vector<7x128xf32> to vector<128xf32>
    %46 = vector.shape_cast %45 : vector<128xf32> to vector<1x128xf32>
    %cst_24 = arith.constant 0.142857149 : f32
    %47 = vector.broadcast %cst_24 : f32 to vector<1x128xf32>
    %48 = arith.mulf %46, %47 : vector<1x128xf32>
    %49 = arith.addf %40, %48 : vector<1x128xf32>
    %c6 = arith.constant 6 : index
    %c0_25 = arith.constant 0 : index
    %50 = vector.load %arg2[%c6, %c0_25] : memref<12x128xf32, #tpu.memory_space<vmem>>, vector<6x128xf32>
    %cst_26 = arith.constant dense<0xFF800000> : vector<128xf32>
    %51 = vector.multi_reduction <maximumf>, %50, %cst_26 [0] : vector<6x128xf32> to vector<128xf32>
    %52 = vector.shape_cast %51 : vector<128xf32> to vector<1x128xf32>
    %53 = arith.addf %44, %52 : vector<1x128xf32>
    %cst_27 = arith.constant dense<0.000000e+00> : vector<128xf32>
    %54 = vector.multi_reduction <add>, %50, %cst_27 [0] : vector<6x128xf32> to vector<128xf32>
    %55 = vector.shape_cast %54 : vector<128xf32> to vector<1x128xf32>
    %cst_28 = arith.constant 0.166666672 : f32
    %56 = vector.broadcast %cst_28 : f32 to vector<1x128xf32>
    %57 = arith.mulf %55, %56 : vector<1x128xf32>
    %58 = arith.addf %49, %57 : vector<1x128xf32>
    %59 = tpu.concatenate %53, %58 in 1 : vector<1x128xf32>, vector<1x128xf32> -> vector<1x256xf32>
    %60 = tpu.concatenate %29, %59 in 0 : vector<1x256xf32>, vector<1x256xf32> -> vector<2x256xf32>
    %c0_29 = arith.constant 0 : index
    %c0_30 = arith.constant 0 : index
    %61 = vector.load %arg3[%c0_29, %c0_30] : memref<256x128xf32, #tpu.memory_space<vmem>>, vector<256x128xf32>
    %cst_31 = arith.constant dense<0.000000e+00> : vector<2x128xf32>
    %62 = tpu.matmul %60, %61, %cst_31 {dimension_numbers = #tpu.dot_dimension_numbers<[1], [0], [0], [1], [0, 0, 1, 1], [], []>} : vector<2x256xf32>, vector<256x128xf32>, vector<2x128xf32> -> vector<2x128xf32>
    %c0_32 = arith.constant 0 : index
    %c0_33 = arith.constant 0 : index
    %63 = vector.load %arg4[%c0_32, %c0_33] : memref<1x128xf32, #tpu.memory_space<vmem>>, vector<1x128xf32>
    %64 = vector.broadcast %63 : vector<1x128xf32> to vector<2x128xf32>
    %65 = arith.addf %62, %64 : vector<2x128xf32>
    %cst_34 = arith.constant 0.000000e+00 : f32
    %66 = vector.broadcast %cst_34 : f32 to vector<2x128xf32>
    %67 = arith.maximumf %65, %66 : vector<2x128xf32>
    %c0_35 = arith.constant 0 : index
    %c0_36 = arith.constant 0 : index
    %68 = vector.load %arg5[%c0_35, %c0_36] : memref<128x64xf32, #tpu.memory_space<vmem>>, vector<128x64xf32>
    %cst_37 = arith.constant dense<0.000000e+00> : vector<2x64xf32>
    %69 = tpu.matmul %67, %68, %cst_37 {dimension_numbers = #tpu.dot_dimension_numbers<[1], [0], [0], [1], [0, 0, 1, 1], [], []>} : vector<2x128xf32>, vector<128x64xf32>, vector<2x64xf32> -> vector<2x64xf32>
    %c0_38 = arith.constant 0 : index
    %c0_39 = arith.constant 0 : index
    %70 = vector.load %arg6[%c0_38, %c0_39] : memref<1x64xf32, #tpu.memory_space<vmem>>, vector<1x64xf32>
    %71 = vector.broadcast %70 : vector<1x64xf32> to vector<2x64xf32>
    %72 = arith.addf %69, %71 : vector<2x64xf32>
    %cst_40 = arith.constant 0.000000e+00 : f32
    %73 = vector.broadcast %cst_40 : f32 to vector<2x64xf32>
    %74 = arith.maximumf %72, %73 : vector<2x64xf32>
    %c0_41 = arith.constant 0 : index
    %c0_42 = arith.constant 0 : index
    %75 = vector.load %arg7[%c0_41, %c0_42] : memref<64x4xf32, #tpu.memory_space<vmem>>, vector<64x4xf32>
    %cst_43 = arith.constant dense<0.000000e+00> : vector<2x4xf32>
    %76 = tpu.matmul %74, %75, %cst_43 {dimension_numbers = #tpu.dot_dimension_numbers<[1], [0], [0], [1], [0, 0, 1, 1], [], []>} : vector<2x64xf32>, vector<64x4xf32>, vector<2x4xf32> -> vector<2x4xf32>
    %c0_44 = arith.constant 0 : index
    %c0_45 = arith.constant 0 : index
    %77 = vector.load %arg8[%c0_44, %c0_45] : memref<1x4xf32, #tpu.memory_space<vmem>>, vector<1x4xf32>
    %78 = vector.broadcast %77 : vector<1x4xf32> to vector<2x4xf32>
    %79 = arith.addf %76, %78 : vector<2x4xf32>
    %cst_46 = arith.constant dense<0xFF800000> : vector<2xf32>
    %80 = vector.multi_reduction <maximumf>, %79, %cst_46 [1] : vector<2x4xf32> to vector<2xf32>
    %81 = vector.shape_cast %80 : vector<2xf32> to vector<2x1xf32>
    %82 = vector.broadcast %81 : vector<2x1xf32> to vector<2x4xf32>
    %83 = arith.subf %79, %82 : vector<2x4xf32>
    %84 = math.exp %83 : vector<2x4xf32>
    %cst_47 = arith.constant dense<0.000000e+00> : vector<2xf32>
    %85 = vector.multi_reduction <add>, %84, %cst_47 [1] : vector<2x4xf32> to vector<2xf32>
    %86 = vector.shape_cast %85 : vector<2xf32> to vector<2x1xf32>
    %87 = math.log %86 : vector<2x1xf32>
    %88 = vector.broadcast %87 : vector<2x1xf32> to vector<2x4xf32>
    %89 = arith.subf %83, %88 : vector<2x4xf32>
    %c0_48 = arith.constant 0 : index
    %c0_49 = arith.constant 0 : index
    %90 = vector.load %arg9[%c0_48, %c0_49] : memref<2x4xf32, #tpu.memory_space<vmem>>, vector<2x4xf32>
    tpu.vector_store %arg9[%c0_48, %c0_49], %89 {strides = array<i32>} : memref<2x4xf32, #tpu.memory_space<vmem>>, vector<2x4xf32>,
    return
  }
}

</mosaic_0001>

<bundles_post_ra>
// kernel: squeeze.7
= control target key start
LH: loop header
LB: loop body
LE: loop exit
PB: predicated region body
PF: predicated region fallthrough
CT: control target
= control target key end

     0   :  { %vm7_vm0 = vcmask 80896   ;;  %s39_s0 = inlined_call_operand.vmem [shape: f32[20], index: 0, kind: input, shape index: {}]   ;;  %s40_s1 = inlined_call_operand.vmem [shape: f32[2,10], index: 1, kind: output, shape index: {}]  }
   0x1   :  { %v4_v0 = vld [vmem:[%s39_s0] sm:$0x1]  ;;  %s22_s0 = smov 118  }
   0x2   :  { %5 = vst [vmem:[#allocation1] sm:$0x1] %v4_v0 }
   0x9   :  { %v9_v1 = vld [vmem:[#allocation1] sm:$0x1]  }
   0xa   :  { %v6_v2 = vld [vmem:[#allocation1] sm:$0x1]   ;;  %10 = vrot.lane.b32.xlu0 %v9_v1, %s22_s0 }
   0xb   :  { %8 = vst.msk [vmem:[#allocation0] sm:$0x1] %vm7_vm0, %v6_v2  }
  0x7c   :  { %v11_v3 = vpop.permute.xlu0 %10  }
  0x7d   :  { %14 = vst.msk [vmem:[#allocation0 + $0x1] sm:$0x1] %vm7_vm0, %v11_v3  }
  0x84   :  { %v18_v4 = vld [vmem:[#allocation0] sm:$0x3] }
  0x85   :  { %20 = vst [vmem:[%s40_s1] sm:$0x3] %v18_v4 }

// kernel: squeeze.9
= control target key start
LH: loop header
LB: loop body
LE: loop exit
PB: predicated region body
PF: predicated region fallthrough
CT: control target
= control target key end

     0   :  { %vm7_vm0 = vcmask 64512   ;;  %s39_s0 = inlined_call_operand.vmem [shape: f32[16], index: 0, kind: input, shape index: {}]   ;;  %s40_s1 = inlined_call_operand.vmem [shape: f32[2,8], index: 1, kind: output, shape index: {}]  }
   0x1   :  { %v4_v0 = vld [vmem:[%s39_s0] sm:$0x1]  ;;  %s22_s0 = smov 120  }
   0x2   :  { %5 = vst [vmem:[#allocation1] sm:$0x1] %v4_v0 }
   0x9   :  { %v9_v1 = vld [vmem:[#allocation1] sm:$0x1]  }
   0xa   :  { %v6_v2 = vld [vmem:[#allocation1] sm:$0x1]   ;;  %10 = vrot.lane.b32.xlu0 %v9_v1, %s22_s0 }
   0xb   :  { %8 = vst.msk [vmem:[#allocation0] sm:$0x1] %vm7_vm0, %v6_v2  }
  0x7c   :  { %v11_v3 = vpop.permute.xlu0 %10  }
  0x7d   :  { %14 = vst.msk [vmem:[#allocation0 + $0x1] sm:$0x1] %vm7_vm0, %v11_v3  }
  0x84   :  { %v18_v4 = vld [vmem:[#allocation0] sm:$0x3] }
  0x85   :  { %20 = vst [vmem:[%s40_s1] sm:$0x3] %v18_v4 }

// kernel: net_forward.4
= control target key start
LH: loop header
LB: loop body
LE: loop exit
PB: predicated region body
PF: predicated region fallthrough
CT: control target
= control target key end

     0   :  { %16 = vsyncpa [#allocation4], 0  ;;  %s655_s30 = smov [#allocation3]   ;;  %s812_s0 = inlined_call_operand.<no memory space> [shape: f32[1], index: 0, kind: input, shape index: {}]   ;;  %s813_s1 = inlined_call_operand.vmem [shape: f32[20,20], index: 1, kind: input, shape index: {}]   ;;  %s814_s2 = inlined_call_operand.vmem [shape: f32[20,16], index: 2, kind: input, shape index: {}]   ;;  %s815_s3 = inlined_call_operand.vmem [shape: f32[16,128], index: 3, kind: input, shape index: {}]   ;;  %s816_s4 = inlined_call_operand.vmem [shape: f32[1,128], index: 4, kind: input, shape index: {}]   ;;  %s817_s5 = inlined_call_operand.hbm [shape: f32[128,128], index: 5, kind: input, shape index: {}]   ;;  %s818_s6 = inlined_call_operand.vmem [shape: f32[1,128], index: 6, kind: input, shape index: {}]   ;;  %s819_s7 = inlined_call_operand.vmem [shape: f32[1,128], index: 7, kind: input, shape index: {}]   ;;  %s820_s8 = inlined_call_operand.vmem [shape: f32[20,128], index: 8, kind: output, shape index: {0}]   ;;  %s821_s9 = inlined_call_operand.vmem [shape: f32[1,20], index: 9, kind: output, shape index: {1}]  }
   0x1   :  { %s32_s10 = sshll.u32 %s655_s30, 4  ;;  %s631_s13 = scalar_lea.hbm %s817_s5, 2048  ;;  %s33_s10 = int_to_ptr.vmem [resolvable:$true] %s32_s10 }
   0x2   :  { %p632_p0 = scmp.ne.s32.totalorder %s817_s5, %s631_s13  ;;  %p635_p1 = scmp.lt.u32.totalorder %s631_s13, %s817_s5 }
   0x4   :  { %p637_p2 = pnand %p635_p1, %p632_p0 }
   0x6   :  { %640 = shalt.err (!%p637_p2)
}
   0x7   :  { %s641_s18 = scalar_lea.vmem %s33_s10, 2048  ;;  %p646_p4 = scmp.lt.s32.totalorder %s33_s10, %s33_s10 }
   0x8   :  { %p642_p3 = scmp.ne.s32.totalorder %s33_s10, %s641_s18  ;;  %p647_p5 = scmp.lt.s32.totalorder %s641_s18, %s641_s18 }
   0xa   :  { %p648_p6 = por %p647_p5, %p646_p4 }
   0xc   :  { %p649_p7 = pnand %p648_p6, %p642_p3 }
   0xe   :  { %652 = shalt.err (!%p649_p7)
}
   0xf   :  { %s656_s19 = smov 128   ;;  %s657_s20 = smov 8  }
  0x10   :  { %38 = dma.hbm_to_vmem [thread:$0]  %s817_s5, 2048, %s33_s10, [#allocation4], %s656_s19, %s656_s19, %s657_s20  }
  0x11   :  { %653 = dma.done.wait [#allocation4], 2048  }
  0x12   :  { %654 = vsyncadd [#allocation4], 4294965248  ;;  %v658_v0 = vmov 0.0|0.0   ;;  %vm659_vm0 = vmmov 0   ;;  %v660_v1 = vmov 0.0   ;;  %v46_v2 = vld [vmem:[%s814_s2] sm:$0xff] }
  0x13   :  { %584 = vmatprep.subr.bf16.mxu0 %v658_v0  ;;  %512 = vmatprep.mubr.msk.f32.mxu0 %vm659_vm0, %v660_v1  ;;  %v735_v3 = vld [vmem:[%s814_s2 + $0x8] sm:$0xff]  ;;  %v155_v5 = vld [vmem:[%s815_s3] sm:$0xff]  ;;  %v748_v7 = vld [vmem:[%s814_s2 + $0x10] sm:$0xf]  ;;  %vm62_vm1 = vcmask 1043456   ;;  %vm52_vm2 = vcmask 162816  }
  0x14   :  { %590 = vmatprep.subr.bf16.mxu1 %v658_v0  ;;  %566 = vmatprep.mubr.msk.f32.mxu1 %vm659_vm0, %v660_v1  ;;  %v585_v4 = vpack.c.bf16 %v735_v3, %v46_v2  ;;  %v156_v6 = vld [vmem:[%s815_s3 + $0x8] sm:$0xff]  ;;  %v49_v8 = vld [vmem:[%s813_s1] sm:$0xff]  ;;  %v51_v11 = vld [vmem:[%s813_s1 + $0x10] sm:$0xf]  ;;  %s147_s16 = sadd.f32 1.0, %s812_s0  ;;  %vm164_vm3 = vcmask 130048  }
  0x15   :  { %v588_v9 = vpack.c.bf16 %v156_v6, %v155_v5  ;;  %v50_v10 = vld [vmem:[%s813_s1 + $0x8] sm:$0xff]  ;;  %v254_v12 = vld [vmem:[#allocation3] sm:$0xff]  ;;  %v256_v14 = vld [vmem:[#allocation3 + $0x10] sm:$0xff]  ;;  %vm365_vm4 = vcmask 1040384   ;;  %vm452_vm5 = vcmask 155648  }
  0x16   :  { %586 = vmatpush3.bf16.msra.mxu0 %v585_v4  ;;  %v255_v13 = vld [vmem:[#allocation3 + $0x8] sm:$0xff]  ;;  %v257_v16 = vld [vmem:[#allocation3 + $0x18] sm:$0xff]  ;;  %v258_v18 = vld [vmem:[#allocation3 + $0x20] sm:$0xff]  ;;  %v148_v33 = vstv %s147_s16 }
  0x17   :  { %510 = vmatprep.subr.mxu0 %v660_v1  ;;  %v591_v15 = vpack.c.bf16 %v255_v13, %v254_v12  ;;  %v594_v17 = vpack.c.bf16 %v257_v16, %v256_v14  ;;  %v259_v19 = vld [vmem:[#allocation3 + $0x28] sm:$0xff]  ;;  %v260_v21 = vld [vmem:[#allocation3 + $0x30] sm:$0xff]  ;;  %v261_v22 = vld [vmem:[#allocation3 + $0x38] sm:$0xff]  ;;  %v149_v34 = vmul.f32 %v148_v33, %v46_v2  ;;  %v150_v38 = vmul.f32 %v148_v33, %v735_v3 }
  0x18   :  { %v597_v20 = vpack.c.bf16 %v259_v19, %v258_v18  ;;  %v600_v23 = vpack.c.bf16 %v261_v22, %v260_v21  ;;  %v262_v24 = vld [vmem:[#allocation3 + $0x40] sm:$0xff]  ;;  %v263_v25 = vld [vmem:[#allocation3 + $0x48] sm:$0xff]  ;;  %v264_v27 = vld [vmem:[#allocation3 + $0x50] sm:$0xff]  ;;  %v151_v42 = vmul.f32 %v148_v33, %v748_v7 }
  0x19   :  { %592 = vmatpush3.bf16.msra.mxu1 %v591_v15  ;;  %v603_v26 = vpack.c.bf16 %v263_v25, %v262_v24  ;;  %v265_v28 = vld [vmem:[#allocation3 + $0x58] sm:$0xff]  ;;  %v266_v30 = vld [vmem:[#allocation3 + $0x60] sm:$0xff]  ;;  %v267_v31 = vld [vmem:[#allocation3 + $0x68] sm:$0xff] }
  0x1a   :  { %511 = vmatpush3.msk.msra.mxu0 %vm62_vm1, %v748_v7  ;;  %593 = vmatprep.subr.bf16.mxu1 %v658_v0  ;;  %v606_v29 = vpack.c.bf16 %v265_v28, %v264_v27  ;;  %v609_v32 = vpack.c.bf16 %v267_v31, %v266_v30  ;;  %v268_v46 = vld [vmem:[#allocation3 + $0x70] sm:$0xff]  ;;  %v269_v47 = vld [vmem:[#allocation3 + $0x78] sm:$0xff]  ;;  %v363_v49 = vld [vmem:[%s819_s7] sm:$0x1] }
  0x1b   :  { %513 = vmatmul.mubr.msk.f32.vlgmr.msra.gmra.mrb[0].mxu0 %vm52_vm2, %v49_v8  ;;  %587 = vmatprep.subr.bf16.mxu0 %v658_v0  ;;  %v612_v48 = vpack.c.bf16 %v269_v47, %v268_v46  ;;  %v364_v50 = vmul.f32 %v363_v49, %v363_v49  ;;  %v467_v52 = vld [vmem:[%s816_s4] ss:$0 sm:$0xff] }
  0x1c   :  { %515 = vmatprep.mubr.msk.f32.mxu0 %vm659_vm0, %v660_v1  ;;  %589 = vmatpush3.bf16.msra.mxu0 %v588_v9  ;;  %v471_v8 = vld [vmem:[%s818_s6] ss:$0 sm:$0xff] }
  0x1d   :  { %614 = vmatprep.subr.bf16.mxu0 %v658_v0  ;;  %595 = vmatpush3.bf16.msra.mxu1 %v594_v17  ;;  %v366_v51 = vsel %vm365_vm4, %v364_v50, 0.0 }
  0x1e   :  { %596 = vmatprep.subr.bf16.mxu1 %v658_v0  ;;  %367 = vadd.xlane.f32.xlu0 %v366_v51 }
  0x1f   :  { %516 = vmatmul.mubr.msk.f32.gmra.mrb[2].mxu0 %vm52_vm2, %v50_v10 }
  0x20   :  { %518 = vmatprep.mubr.msk.f32.mxu0 %vm659_vm0, %v660_v1 }
  0x21   :  { %598 = vmatpush3.bf16.msra.mxu1 %v597_v20 }
  0x22   :  { %599 = vmatprep.subr.bf16.mxu1 %v658_v0 }
  0x23   :  { %519 = vmatmul.mubr.msk.f32.gmra.mrb[4].mxu0 %vm52_vm2, %v51_v11 }
  0x24   :  { %525 = vmatprep.mubr.msk.f32.mxu0 %vm659_vm0, %v660_v1 }
  0x25   :  { %601 = vmatpush3.bf16.msra.mxu1 %v600_v23 }
  0x26   :  { %602 = vmatprep.subr.bf16.mxu1 %v658_v0 }
  0x29   :  { %604 = vmatpush3.bf16.msra.mxu1 %v603_v26 }
  0x2a   :  { %605 = vmatprep.subr.bf16.mxu1 %v658_v0 }
  0x2d   :  { %607 = vmatpush3.bf16.msra.mxu1 %v606_v29 }
  0x2e   :  { %608 = vmatprep.subr.bf16.mxu1 %v658_v0 }
  0x31   :  { %610 = vmatpush3.bf16.msra.mxu1 %v609_v32 }
  0x32   :  { %611 = vmatprep.subr.bf16.mxu1 %v658_v0 }
  0x35   :  { %613 = vmatpush3.bf16.msra.mxu1 %v612_v48 }
  0xab   :  { %v368_v62 = vpop.xlane.xlu0 %367 }
  0xac   :  { %v369_v63 = vrot.slane %v368_v62, 4 }
  0xae   :  { %v370_v0 = vadd.f32 %v369_v63, %v368_v62 }
  0xb0   :  { %v371_v2 = vrot.slane %v370_v0, 2 }
  0xb2   :  { %v372_v3 = vadd.f32 %v371_v2, %v370_v0 }
  0xb4   :  { %v373_v4 = vrot.slane %v372_v3, 1 }
  0xb6   :  { %v374_v5 = vadd.f32 %v373_v4, %v372_v3 }
  0xb8   :  { %617 = vpush %v374_v5 }
  0xe9   :  { %s618_s4 = spop %617 }
  0xea   :  { %v376_v6 = vstv %s618_s4 }
  0xeb   :  { %627 = vrsqrt.f32 %v376_v6 }
  0xee   :  { %v132_v35 = vpop.f32.mrb[0].mxu0 }
  0xef   :  { %v152_v36 = vadd.f32 %v149_v34, %v132_v35  ;;  %v514_v37 = vpop.f32.mrb[1].mxu0 }
  0xf1   :  { %526 = vmatmul.mubr.msk.f32.vlgmr.msra.gmra.mrb[6].mxu0 %vm164_vm3, %v152_v36 }
  0xf2   :  { %v137_v39 = vpop.f32.mrb[2].mxu0  ;;  %528 = vmatprep.mubr.msk.f32.mxu0 %vm659_vm0, %v660_v1 }
  0xf3   :  { %v153_v40 = vadd.f32 %v150_v38, %v137_v39  ;;  %v517_v41 = vpop.f32.mrb[3].mxu0 }
  0xf5   :  { %529 = vmatmul.mubr.msk.f32.gmra.mrb[8].mxu0 %vm164_vm3, %v153_v40  ;;  %v628_v7 = vpop.eup %627 }
  0xf6   :  { %v142_v43 = vpop.f32.mrb[4].mxu0  ;;  %531 = vmatprep.mubr.msk.f32.mxu0 %vm659_vm0, %v660_v1  ;;  %619 = vpush %v628_v7 }
  0xf7   :  { %v154_v44 = vadd.f32 %v151_v42, %v142_v43  ;;  %v520_v45 = vpop.f32.mrb[5].mxu0 }
  0xf9   :  { %532 = vmatmul.mubr.msk.f32.gmra.mrb[10].mxu0 %vm164_vm3, %v154_v44 }
  0xfa   :  { %581 = vmatprep.mubr.msk.f32.mxu0 %vm659_vm0, %v660_v1 }
 0x127   :  { %s620_s25 = spop %619 }
 0x128   :  { %v449_v22 = vstv %s620_s25 }
 0x1c4   :  { %v240_v53 = vpop.f32.mrb[6].mxu0 }
 0x1c5   :  { %v241_v54 = vadd.f32 %v467_v52, %v240_v53  ;;  %v527_v55 = vpop.f32.mrb[7].mxu0 }
 0x1c7   :  { %567 = vmatmul.mubr.f32.vlgmr.msra.gmra.mrb[0].mxu1 %v241_v54 }
 0x1c8   :  { %v245_v56 = vpop.f32.mrb[8].mxu0  ;;  %569 = vmatprep.mubr.msk.f32.mxu1 %vm659_vm0, %v660_v1 }
 0x1c9   :  { %v246_v57 = vadd.f32 %v467_v52, %v245_v56  ;;  %v530_v58 = vpop.f32.mrb[9].mxu0 }
 0x1cb   :  { %570 = vmatmul.mubr.f32.gmra.mrb[2].mxu1 %v246_v57 }
 0x1cc   :  { %v250_v59 = vpop.f32.mrb[10].mxu0  ;;  %572 = vmatprep.mubr.msk.f32.mxu1 %vm659_vm0, %v660_v1 }
 0x1cd   :  { %v251_v60 = vadd.f32 %v467_v52, %v250_v59  ;;  %v533_v61 = vpop.f32.mrb[11].mxu0 }
 0x1cf   :  { %573 = vmatmul.mubr.f32.gmra.mrb[4].mxu1 %v251_v60 }
 0x29a   :  { %v343_v9 = vpop.f32.mrb[0].mxu1 }
 0x29b   :  { %v344_v10 = vadd.f32 %v471_v8, %v343_v9  ;;  %v568_v11 = vpop.f32.mrb[1].mxu1 }
 0x29d   :  { %v357_v12 = vmax.f32 %v344_v10, 0.0 }
 0x29e   :  { %v348_v13 = vpop.f32.mrb[2].mxu1 }
 0x29f   :  { %360 = vst [vmem:[%s820_s8] sm:$0xff] %v357_v12  ;;  %v349_v14 = vadd.f32 %v471_v8, %v348_v13  ;;  %v571_v15 = vpop.f32.mrb[3].mxu1 }
 0x2a1   :  { %v358_v16 = vmax.f32 %v349_v14, 0.0 }
 0x2a2   :  { %v353_v17 = vpop.f32.mrb[4].mxu1 }
 0x2a3   :  { %361 = vst [vmem:[%s820_s8 + $0x8] sm:$0xff] %v358_v16  ;;  %v615_v18 = vpack.c.bf16 %v358_v16, %v357_v12  ;;  %v354_v19 = vadd.f32 %v471_v8, %v353_v17  ;;  %v574_v20 = vpop.f32.mrb[5].mxu1 }
 0x2a5   :  { %616 = vmatpush3.bf16.xpose.msra.mxu0 %v615_v18  ;;  %v359_v21 = vmax.f32 %v354_v19, 0.0 }
 0x2a6   :  { %579 = vmatprep.subr.mxu0 %v660_v1 }
 0x2a7   :  { %362 = vst [vmem:[%s820_s8 + $0x10] sm:$0xf] %v359_v21 }
 0x2ad   :  { %580 = vmatpush3.xpose.msra.mxu0 %v359_v21 }
 0x2b0   :  { %582 = vmatmul.mubr.f32.vlgmr.msra.gmra.mrb[12].mxu0 %v363_v49 }
 0x383   :  { %v445_v23 = vpop.f32.mrb[12].mxu0 }
 0x384   :  { %v450_v24 = vmul.f32 %v449_v22, %v445_v23  ;;  %v583_v25 = vpop.f32.mrb[13].mxu0 }
 0x386   :  { %629 = vtanh.f32 %v450_v24 }
 0x390   :  { %v630_v26 = vpop.eup %629 }
 0x391   :  { %453 = vst.msk [vmem:[%s821_s9] sm:$0x1] %vm452_vm5, %v630_v26 }
 0x392   :  { %462 = vsyncpa [#allocation4], 1 }

// kernel: net_forward.5
= control target key start
LH: loop header
LB: loop body
LE: loop exit
PB: predicated region body
PF: predicated region fallthrough
CT: control target
= control target key end

     0   :  { %vm26_vm0 = vcmask 130048   ;;  %vm228_vm1 = vcmask 1040384   ;;  %v437_v58 = vmov 0.0|0.0   ;;  %vm438_vm2 = vmmov 0   ;;  %s604_s1 = inlined_call_operand.vmem [shape: f32[16,128], index: 1, kind: input, shape index: {}]   ;;  %s605_s0 = inlined_call_operand.vmem [shape: f32[16,16], index: 0, kind: input, shape index: {}]   ;;  %s606_s2 = inlined_call_operand.vmem [shape: f32[256,128], index: 2, kind: input, shape index: {}]   ;;  %s607_s4 = inlined_call_operand.vmem [shape: f32[1,128], index: 4, kind: input, shape index: {}]   ;;  %s608_s3 = inlined_call_operand.vmem [shape: f32[1,128], index: 3, kind: input, shape index: {}]   ;;  %s609_s5 = inlined_call_operand.vmem [shape: f32[16,128], index: 5, kind: output, shape index: {0}]   ;;  %s610_s6 = inlined_call_operand.vmem [shape: f32[1,16], index: 6, kind: output, shape index: {1}]  }
   0x1   :  { %v22_v0 = vld [vmem:[%s604_s1] sm:$0xff]  ;;  %v481_v1 = vld [vmem:[%s604_s1 + $0x8] sm:$0xff]  ;;  %v126_v9 = vld [vmem:[%s606_s2 + $0x90] sm:$0xff]  ;;  %v439_v59 = vmov 0.0   ;;  %vm315_vm3 = vcmask 122880  }
   0x2   :  { %v24_v2 = vld [vmem:[%s605_s0] sm:$0xff]  ;;  %v387_v3 = vpack.c.bf16 %v481_v1, %v22_v0  ;;  %v125_v5 = vld [vmem:[%s606_s2 + $0x88] sm:$0xff]  ;;  %211 = vmatprep.mubr.f32.mxu1 %v22_v0  ;;  %v127_v11 = vld [vmem:[%s606_s2 + $0x98] sm:$0xff] }
   0x3   :  { %377 = vmatprep.mubr.msk.f32.mxu0 %vm26_vm0, %v24_v2  ;;  %v124_v4 = vld [vmem:[%s606_s2 + $0x80] sm:$0xff]  ;;  %v109_v8 = vld [vmem:[%s606_s2 + $0x8] sm:$0xff]  ;;  %v110_v12 = vld [vmem:[%s606_s2 + $0x10] sm:$0xff]  ;;  %v395_v15 = vpack.c.bf16 %v127_v11, %v126_v9 }
   0x4   :  { %v391_v6 = vpack.c.bf16 %v125_v5, %v124_v4  ;;  %v108_v7 = vld [vmem:[%s606_s2] sm:$0xff]  ;;  %388 = vmatprep.subr.bf16.mxu0 %v387_v3  ;;  %v111_v13 = vld [vmem:[%s606_s2 + $0x18] sm:$0xff]  ;;  %v25_v14 = vld [vmem:[%s605_s0 + $0x8] sm:$0xff] }
   0x5   :  { %v393_v10 = vpack.c.bf16 %v109_v8, %v108_v7  ;;  %390 = vmatpush3.bf16.msra.mxu0 %v387_v3  ;;  %v128_v16 = vld [vmem:[%s606_s2 + $0xa0] sm:$0xff]  ;;  %v129_v17 = vld [vmem:[%s606_s2 + $0xa8] sm:$0xff]  ;;  %v397_v18 = vpack.c.bf16 %v111_v13, %v110_v12  ;;  %v130_v22 = vld [vmem:[%s606_s2 + $0xb0] sm:$0xff] }
   0x6   :  { %392 = vmatprep.subr.bf16.mxu1 %v391_v6  ;;  %v399_v19 = vpack.c.bf16 %v129_v17, %v128_v16  ;;  %v112_v20 = vld [vmem:[%s606_s2 + $0x20] sm:$0xff]  ;;  %v113_v21 = vld [vmem:[%s606_s2 + $0x28] sm:$0xff]  ;;  %v131_v23 = vld [vmem:[%s606_s2 + $0xb8] sm:$0xff]  ;;  %423 = vmatprep.subr.bf16.mxu0 %v437_v58 }
   0x7   :  { %394 = vmatpush3.bf16.msra.mxu1 %v393_v10  ;;  %v401_v24 = vpack.c.bf16 %v113_v21, %v112_v20  ;;  %v403_v25 = vpack.c.bf16 %v131_v23, %v130_v22  ;;  %v114_v26 = vld [vmem:[%s606_s2 + $0x30] sm:$0xff]  ;;  %v115_v27 = vld [vmem:[%s606_s2 + $0x38] sm:$0xff]  ;;  %v132_v28 = vld [vmem:[%s606_s2 + $0xc0] sm:$0xff] }
   0x8   :  { %396 = vmatprep.subr.bf16.mxu1 %v395_v15  ;;  %378 = vmatmul.mubr.msk.f32.vlgmr.msra.gmra.mrb[0].mxu0 %vm26_vm0, %v25_v14  ;;  %v133_v29 = vld [vmem:[%s606_s2 + $0xc8] sm:$0xff]  ;;  %v405_v30 = vpack.c.bf16 %v115_v27, %v114_v26  ;;  %v116_v32 = vld [vmem:[%s606_s2 + $0x40] sm:$0xff]  ;;  %v134_v34 = vld [vmem:[%s606_s2 + $0xd0] sm:$0xff] }
   0x9   :  { %v407_v31 = vpack.c.bf16 %v133_v29, %v132_v28  ;;  %v117_v33 = vld [vmem:[%s606_s2 + $0x48] sm:$0xff]  ;;  %v135_v35 = vld [vmem:[%s606_s2 + $0xd8] sm:$0xff]  ;;  %v118_v38 = vld [vmem:[%s606_s2 + $0x50] sm:$0xff]  ;;  %384 = vmatprep.mubr.msk.f32.mxu0 %vm438_vm2, %v439_v59 }
   0xa   :  { %v409_v36 = vpack.c.bf16 %v117_v33, %v116_v32  ;;  %v411_v37 = vpack.c.bf16 %v135_v35, %v134_v34  ;;  %v119_v39 = vld [vmem:[%s606_s2 + $0x58] sm:$0xff]  ;;  %v136_v40 = vld [vmem:[%s606_s2 + $0xe0] sm:$0xff]  ;;  %v137_v41 = vld [vmem:[%s606_s2 + $0xe8] sm:$0xff] }
   0xb   :  { %398 = vmatpush3.bf16.msra.mxu1 %v397_v18  ;;  %v413_v42 = vpack.c.bf16 %v119_v39, %v118_v38  ;;  %v415_v43 = vpack.c.bf16 %v137_v41, %v136_v40  ;;  %v120_v44 = vld [vmem:[%s606_s2 + $0x60] sm:$0xff]  ;;  %v121_v45 = vld [vmem:[%s606_s2 + $0x68] sm:$0xff]  ;;  %v138_v46 = vld [vmem:[%s606_s2 + $0xf0] sm:$0xff] }
   0xc   :  { %400 = vmatprep.subr.bf16.mxu1 %v399_v19  ;;  %v139_v47 = vld [vmem:[%s606_s2 + $0xf8] sm:$0xff]  ;;  %v417_v48 = vpack.c.bf16 %v121_v45, %v120_v44  ;;  %v122_v50 = vld [vmem:[%s606_s2 + $0x70] sm:$0xff]  ;;  %v226_v53 = vld [vmem:[%s607_s4] sm:$0x1] }
   0xd   :  { %v419_v49 = vpack.c.bf16 %v139_v47, %v138_v46  ;;  %v123_v51 = vld [vmem:[%s606_s2 + $0x78] sm:$0xff]  ;;  %v227_v54 = vmul.f32 %v226_v53, %v226_v53  ;;  %v327_v6 = vld [vmem:[%s608_s3] ss:$0 sm:$0xff] }
   0xe   :  { %v421_v52 = vpack.c.bf16 %v123_v51, %v122_v50 }
   0xf   :  { %402 = vmatpush3.bf16.msra.mxu1 %v401_v24  ;;  %v229_v55 = vsel %vm228_vm1, %v227_v54, 0.0 }
  0x10   :  { %404 = vmatprep.subr.bf16.mxu1 %v403_v25  ;;  %230 = vadd.xlane.f32.xlu0 %v229_v55 }
  0x13   :  { %406 = vmatpush3.bf16.msra.mxu1 %v405_v30 }
  0x14   :  { %408 = vmatprep.subr.bf16.mxu1 %v407_v31 }
  0x17   :  { %410 = vmatpush3.bf16.msra.mxu1 %v409_v36 }
  0x18   :  { %412 = vmatprep.subr.bf16.mxu1 %v411_v37 }
  0x1b   :  { %414 = vmatpush3.bf16.msra.mxu1 %v413_v42 }
  0x1c   :  { %416 = vmatprep.subr.bf16.mxu1 %v415_v43 }
  0x1f   :  { %418 = vmatpush3.bf16.msra.mxu1 %v417_v48 }
  0x20   :  { %420 = vmatprep.subr.bf16.mxu1 %v419_v49 }
  0x23   :  { %422 = vmatpush3.bf16.msra.mxu1 %v421_v52 }
  0x9d   :  { %v231_v60 = vpop.xlane.xlu0 %230 }
  0x9e   :  { %v232_v61 = vrot.slane %v231_v60, 4 }
  0xa0   :  { %v233_v62 = vadd.f32 %v232_v61, %v231_v60 }
  0xa2   :  { %v234_v63 = vrot.slane %v233_v62, 2 }
  0xa4   :  { %v235_v0 = vadd.f32 %v234_v63, %v233_v62 }
  0xa6   :  { %v236_v2 = vrot.slane %v235_v0, 1 }
  0xa8   :  { %v237_v3 = vadd.f32 %v236_v2, %v235_v0 }
  0xaa   :  { %426 = vpush %v237_v3 }
  0xdb   :  { %v379_v56 = vpop.f32.mrb[0].mxu0  ;;  %s427_s2 = spop %426 }
  0xdc   :  { %v99_v57 = vpop.f32.mrb[1].mxu0  ;;  %v239_v4 = vstv %s427_s2 }
  0xdd   :  { %212 = vmatmul.mubr.f32.vlgmr.msra.gmra.mrb[0].mxu1 %v99_v57  ;;  %433 = vrsqrt.f32 %v239_v4 }
  0xde   :  { %216 = vmatprep.mubr.f32.mxu1 %v481_v1 }
  0xe1   :  { %217 = vmatmul.mubr.f32.gmra.mrb[2].mxu1 %v379_v56 }
  0xe7   :  { %v434_v5 = vpop.eup %433 }
  0xe8   :  { %428 = vpush %v434_v5 }
 0x119   :  { %s429_s3 = spop %428 }
 0x11a   :  { %v312_v17 = vstv %s429_s3 }
 0x1b0   :  { %v364_v1 = vpop.f32.mrb[0].mxu1 }
 0x1b1   :  { %v365_v7 = vpop.f32.mrb[1].mxu1 }
 0x1b2   :  { %v366_v8 = vadd.f32 %v365_v7, %v364_v1 }
 0x1b4   :  { %v214_v9 = vadd.f32 %v366_v8, %v327_v6  ;;  %v367_v10 = vpop.f32.mrb[2].mxu1 }
 0x1b5   :  { %v368_v11 = vpop.f32.mrb[3].mxu1 }
 0x1b6   :  { %v222_v12 = vmax.f32 %v214_v9, 0.0  ;;  %v369_v13 = vadd.f32 %v368_v11, %v367_v10 }
 0x1b8   :  { %224 = vst [vmem:[%s609_s5] sm:$0xff] %v222_v12  ;;  %v219_v14 = vadd.f32 %v369_v13, %v327_v6 }
 0x1ba   :  { %v223_v15 = vmax.f32 %v219_v14, 0.0 }
 0x1bc   :  { %225 = vst [vmem:[%s609_s5 + $0x8] sm:$0xff] %v223_v15  ;;  %v424_v16 = vpack.c.bf16 %v223_v15, %v222_v12 }
 0x1be   :  { %425 = vmatpush3.bf16.xpose.msra.mxu0 %v424_v16 }
 0x1c5   :  { %385 = vmatmul.mubr.f32.vlgmr.msra.gmra.mrb[2].mxu0 %v226_v53 }
 0x298   :  { %v308_v18 = vpop.f32.mrb[2].mxu0 }
 0x299   :  { %v313_v19 = vmul.f32 %v312_v17, %v308_v18  ;;  %v386_v20 = vpop.f32.mrb[3].mxu0 }
 0x29b   :  { %435 = vtanh.f32 %v313_v19 }
 0x2a5   :  { %v436_v21 = vpop.eup %435 }
 0x2a6   :  { %316 = vst.msk [vmem:[%s610_s6] sm:$0x1] %vm315_vm3, %v436_v21 }

// kernel: squeeze.11
= control target key start
LH: loop header
LB: loop body
LE: loop exit
PB: predicated region body
PF: predicated region fallthrough
CT: control target
= control target key end

     0   :  { %vm7_vm0 = vcmask 56320   ;;  %s39_s0 = inlined_call_operand.vmem [shape: f32[14], index: 0, kind: input, shape index: {}]   ;;  %s40_s1 = inlined_call_operand.vmem [shape: f32[2,7], index: 1, kind: output, shape index: {}]  }
   0x1   :  { %v4_v0 = vld [vmem:[%s39_s0] sm:$0x1]  ;;  %s22_s0 = smov 121  }
   0x2   :  { %5 = vst [vmem:[#allocation1] sm:$0x1] %v4_v0 }
   0x9   :  { %v9_v1 = vld [vmem:[#allocation1] sm:$0x1]  }
   0xa   :  { %v6_v2 = vld [vmem:[#allocation1] sm:$0x1]   ;;  %10 = vrot.lane.b32.xlu0 %v9_v1, %s22_s0 }
   0xb   :  { %8 = vst.msk [vmem:[#allocation0] sm:$0x1] %vm7_vm0, %v6_v2  }
  0x7c   :  { %v11_v3 = vpop.permute.xlu0 %10  }
  0x7d   :  { %14 = vst.msk [vmem:[#allocation0 + $0x1] sm:$0x1] %vm7_vm0, %v11_v3  }
  0x84   :  { %v18_v4 = vld [vmem:[#allocation0] sm:$0x3] }
  0x85   :  { %20 = vst [vmem:[%s40_s1] sm:$0x3] %v18_v4 }

// kernel: net_forward.6
= control target key start
LH: loop header
LB: loop body
LE: loop exit
PB: predicated region body
PF: predicated region fallthrough
CT: control target
= control target key end

     0   :  { %vm33_vm0 = vcmask 1045504   ;;  %vm26_vm1 = vcmask 113664   ;;  %vm445_vm2 = vmmov 1   ;;  %vm232_vm4 = vcmask 1040384   ;;  %s621_s1 = inlined_call_operand.vmem [shape: f32[14,128], index: 1, kind: input, shape index: {}]   ;;  %s622_s0 = inlined_call_operand.vmem [shape: f32[14,14], index: 0, kind: input, shape index: {}]   ;;  %s623_s2 = inlined_call_operand.vmem [shape: f32[256,128], index: 2, kind: input, shape index: {}]   ;;  %s624_s4 = inlined_call_operand.vmem [shape: f32[1,128], index: 4, kind: input, shape index: {}]   ;;  %s625_s3 = inlined_call_operand.vmem [shape: f32[1,128], index: 3, kind: input, shape index: {}]   ;;  %s626_s5 = inlined_call_operand.vmem [shape: f32[14,128], index: 5, kind: output, shape index: {0}]   ;;  %s627_s6 = inlined_call_operand.vmem [shape: f32[1,14], index: 6, kind: output, shape index: {1}]  }
   0x1   :  { %v22_v0 = vld [vmem:[%s621_s1] sm:$0xff]  ;;  %v490_v1 = vld [vmem:[%s621_s1 + $0x8] sm:$0x3f]  ;;  %vm492_vm3 = vmpackc.low %vm33_vm0, %vm445_vm2  ;;  %v446_v59 = vmov 0.0|0.0   ;;  %vm447_vm5 = vmmov 0   ;;  %v448_v60 = vmov 0.0  }
   0x2   :  { %v392_v3 = vpack.c.bf16 %v490_v1, %v22_v0  ;;  %v24_v4 = vld [vmem:[%s622_s0] sm:$0xff]  ;;  %215 = vmatprep.mubr.f32.mxu1 %v22_v0  ;;  %v25_v6 = vld [vmem:[%s622_s0 + $0x8] sm:$0x3f]  ;;  %v130_v12 = vld [vmem:[%s623_s2 + $0x90] sm:$0xff]  ;;  %vm319_vm6 = vcmask 106496  }
   0x3   :  { %v128_v5 = vld [vmem:[%s623_s2 + $0x80] sm:$0xff]  ;;  %382 = vmatprep.mubr.msk.f32.mxu0 %vm26_vm1, %v24_v4  ;;  %v129_v7 = vld [vmem:[%s623_s2 + $0x88] sm:$0xff]  ;;  %v131_v13 = vld [vmem:[%s623_s2 + $0x98] sm:$0xff] }
   0x4   :  { %v112_v8 = vld [vmem:[%s623_s2] sm:$0xff]  ;;  %v113_v9 = vld [vmem:[%s623_s2 + $0x8] sm:$0xff]  ;;  %394 = vmatprep.subr.msk.bf16.mxu0 %vm492_vm3, %v392_v3  ;;  %v398_v10 = vpack.c.bf16 %v129_v7, %v128_v5  ;;  %v114_v14 = vld [vmem:[%s623_s2 + $0x10] sm:$0xff]  ;;  %v402_v15 = vpack.c.bf16 %v131_v13, %v130_v12 }
   0x5   :  { %v400_v11 = vpack.c.bf16 %v113_v9, %v112_v8  ;;  %397 = vmatpush3.bf16.msk.msra.mxu0 %vm492_vm3, %v392_v3  ;;  %v115_v16 = vld [vmem:[%s623_s2 + $0x18] sm:$0xff]  ;;  %v132_v17 = vld [vmem:[%s623_s2 + $0xa0] sm:$0xff]  ;;  %v133_v18 = vld [vmem:[%s623_s2 + $0xa8] sm:$0xff] }
   0x6   :  { %399 = vmatprep.subr.bf16.mxu1 %v398_v10  ;;  %v404_v19 = vpack.c.bf16 %v115_v16, %v114_v14  ;;  %v406_v20 = vpack.c.bf16 %v133_v18, %v132_v17  ;;  %v116_v21 = vld [vmem:[%s623_s2 + $0x20] sm:$0xff]  ;;  %v117_v22 = vld [vmem:[%s623_s2 + $0x28] sm:$0xff]  ;;  %v134_v23 = vld [vmem:[%s623_s2 + $0xb0] sm:$0xff]  ;;  %430 = vmatprep.subr.bf16.mxu0 %v446_v59 }
   0x7   :  { %401 = vmatpush3.bf16.msra.mxu1 %v400_v11  ;;  %v135_v24 = vld [vmem:[%s623_s2 + $0xb8] sm:$0xff]  ;;  %v408_v25 = vpack.c.bf16 %v117_v22, %v116_v21  ;;  %v118_v27 = vld [vmem:[%s623_s2 + $0x30] sm:$0xff]  ;;  %v136_v29 = vld [vmem:[%s623_s2 + $0xc0] sm:$0xff] }
   0x8   :  { %383 = vmatmul.mubr.msk.f32.vlgmr.msra.gmra.mrb[0].mxu0 %vm26_vm1, %v25_v6  ;;  %403 = vmatprep.subr.bf16.mxu1 %v402_v15  ;;  %v410_v26 = vpack.c.bf16 %v135_v24, %v134_v23  ;;  %v119_v28 = vld [vmem:[%s623_s2 + $0x38] sm:$0xff]  ;;  %v137_v30 = vld [vmem:[%s623_s2 + $0xc8] sm:$0xff]  ;;  %v120_v33 = vld [vmem:[%s623_s2 + $0x40] sm:$0xff] }
   0x9   :  { %v412_v31 = vpack.c.bf16 %v119_v28, %v118_v27  ;;  %v414_v32 = vpack.c.bf16 %v137_v30, %v136_v29  ;;  %v121_v34 = vld [vmem:[%s623_s2 + $0x48] sm:$0xff]  ;;  %v138_v35 = vld [vmem:[%s623_s2 + $0xd0] sm:$0xff]  ;;  %v139_v36 = vld [vmem:[%s623_s2 + $0xd8] sm:$0xff]  ;;  %389 = vmatprep.mubr.msk.f32.mxu0 %vm447_vm5, %v448_v60 }
   0xa   :  { %v416_v37 = vpack.c.bf16 %v121_v34, %v120_v33  ;;  %v418_v38 = vpack.c.bf16 %v139_v36, %v138_v35  ;;  %v122_v39 = vld [vmem:[%s623_s2 + $0x50] sm:$0xff]  ;;  %v123_v40 = vld [vmem:[%s623_s2 + $0x58] sm:$0xff]  ;;  %v140_v41 = vld [vmem:[%s623_s2 + $0xe0] sm:$0xff] }
   0xb   :  { %405 = vmatpush3.bf16.msra.mxu1 %v404_v19  ;;  %v141_v42 = vld [vmem:[%s623_s2 + $0xe8] sm:$0xff]  ;;  %v420_v43 = vpack.c.bf16 %v123_v40, %v122_v39  ;;  %v124_v45 = vld [vmem:[%s623_s2 + $0x60] sm:$0xff]  ;;  %v142_v47 = vld [vmem:[%s623_s2 + $0xf0] sm:$0xff] }
   0xc   :  { %407 = vmatprep.subr.bf16.mxu1 %v406_v20  ;;  %v422_v44 = vpack.c.bf16 %v141_v42, %v140_v41  ;;  %v125_v46 = vld [vmem:[%s623_s2 + $0x68] sm:$0xff]  ;;  %v143_v48 = vld [vmem:[%s623_s2 + $0xf8] sm:$0xff]  ;;  %v126_v51 = vld [vmem:[%s623_s2 + $0x70] sm:$0xff] }
   0xd   :  { %v424_v49 = vpack.c.bf16 %v125_v46, %v124_v45  ;;  %v426_v50 = vpack.c.bf16 %v143_v48, %v142_v47  ;;  %v127_v52 = vld [vmem:[%s623_s2 + $0x78] sm:$0xff]  ;;  %v230_v54 = vld [vmem:[%s624_s4] sm:$0x1] }
   0xe   :  { %v428_v53 = vpack.c.bf16 %v127_v52, %v126_v51  ;;  %v231_v55 = vmul.f32 %v230_v54, %v230_v54  ;;  %v332_v7 = vld [vmem:[%s625_s3] ss:$0 sm:$0xff] }
   0xf   :  { %409 = vmatpush3.bf16.msra.mxu1 %v408_v25 }
  0x10   :  { %411 = vmatprep.subr.bf16.mxu1 %v410_v26  ;;  %v233_v56 = vsel %vm232_vm4, %v231_v55, 0.0 }
  0x11   :  { %234 = vadd.xlane.f32.xlu0 %v233_v56 }
  0x13   :  { %413 = vmatpush3.bf16.msra.mxu1 %v412_v31 }
  0x14   :  { %415 = vmatprep.subr.bf16.mxu1 %v414_v32 }
  0x17   :  { %417 = vmatpush3.bf16.msra.mxu1 %v416_v37 }
  0x18   :  { %419 = vmatprep.subr.bf16.mxu1 %v418_v38 }
  0x1b   :  { %421 = vmatpush3.bf16.msra.mxu1 %v420_v43 }
  0x1c   :  { %423 = vmatprep.subr.bf16.mxu1 %v422_v44 }
  0x1f   :  { %425 = vmatpush3.bf16.msra.mxu1 %v424_v49 }
  0x20   :  { %427 = vmatprep.subr.bf16.mxu1 %v426_v50 }
  0x23   :  { %429 = vmatpush3.bf16.msra.mxu1 %v428_v53 }
  0x9e   :  { %v235_v61 = vpop.xlane.xlu0 %234 }
  0x9f   :  { %v236_v62 = vrot.slane %v235_v61, 4 }
  0xa1   :  { %v237_v63 = vadd.f32 %v236_v62, %v235_v61 }
  0xa3   :  { %v238_v0 = vrot.slane %v237_v63, 2 }
  0xa5   :  { %v239_v2 = vadd.f32 %v238_v0, %v237_v63 }
  0xa7   :  { %v240_v3 = vrot.slane %v239_v2, 1 }
  0xa9   :  { %v241_v4 = vadd.f32 %v240_v3, %v239_v2 }
  0xab   :  { %433 = vpush %v241_v4 }
  0xdb   :  { %v384_v57 = vpop.f32.mrb[0].mxu0 }
  0xdc   :  { %v103_v58 = vpop.f32.mrb[1].mxu0  ;;  %s434_s2 = spop %433 }
  0xdd   :  { %216 = vmatmul.mubr.f32.vlgmr.msra.gmra.mrb[0].mxu1 %v103_v58  ;;  %v243_v5 = vstv %s434_s2 }
  0xde   :  { %220 = vmatprep.mubr.f32.mxu1 %v490_v1  ;;  %441 = vrsqrt.f32 %v243_v5 }
  0xe1   :  { %221 = vmatmul.mubr.f32.gmra.mrb[2].mxu1 %v384_v57 }
  0xe8   :  { %v442_v6 = vpop.eup %441 }
  0xe9   :  { %435 = vpush %v442_v6 }
 0x11a   :  { %s436_s3 = spop %435 }
 0x11b   :  { %v316_v18 = vstv %s436_s3 }
 0x1b0   :  { %v369_v1 = vpop.f32.mrb[0].mxu1 }
 0x1b1   :  { %v370_v8 = vpop.f32.mrb[1].mxu1 }
 0x1b2   :  { %v371_v9 = vadd.f32 %v370_v8, %v369_v1 }
 0x1b4   :  { %v218_v10 = vadd.f32 %v371_v9, %v332_v7  ;;  %v372_v11 = vpop.f32.mrb[2].mxu1 }
 0x1b5   :  { %v373_v12 = vpop.f32.mrb[3].mxu1 }
 0x1b6   :  { %v226_v13 = vmax.f32 %v218_v10, 0.0  ;;  %v374_v14 = vadd.f32 %v373_v12, %v372_v11 }
 0x1b8   :  { %228 = vst [vmem:[%s626_s5] sm:$0xff] %v226_v13  ;;  %v223_v15 = vadd.f32 %v374_v14, %v332_v7 }
 0x1ba   :  { %v227_v16 = vmax.f32 %v223_v15, 0.0 }
 0x1bc   :  { %229 = vst [vmem:[%s626_s5 + $0x8] sm:$0x3f] %v227_v16  ;;  %v431_v17 = vpack.c.bf16 %v227_v16, %v226_v13 }
 0x1be   :  { %432 = vmatpush3.bf16.xpose.msra.mxu0 %v431_v17 }
 0x1c5   :  { %390 = vmatmul.mubr.f32.vlgmr.msra.gmra.mrb[2].mxu0 %v230_v54 }
 0x298   :  { %v312_v19 = vpop.f32.mrb[2].mxu0 }
 0x299   :  { %v317_v20 = vmul.f32 %v316_v18, %v312_v19  ;;  %v391_v21 = vpop.f32.mrb[3].mxu0 }
 0x29b   :  { %443 = vtanh.f32 %v317_v20 }
 0x2a5   :  { %v444_v22 = vpop.eup %443 }
 0x2a6   :  { %320 = vst.msk [vmem:[%s627_s6] sm:$0x1] %vm319_vm6, %v444_v22 }

// kernel: net_forward.7
= control target key start
LH: loop header
LB: loop body
LE: loop exit
PB: predicated region body
PF: predicated region fallthrough
CT: control target
= control target key end

     0   :  { %v688_v12 = vmov 0.0|0.0   ;;  %vm50_vm0 = vcmask 1046528   ;;  %vm69_vm1 = vcmask 1045504   ;;  %s1034_s0 = inlined_call_operand.vmem [shape: f32[16,128], index: 0, kind: input, shape index: {}]   ;;  %s1035_s1 = inlined_call_operand.vmem [shape: f32[14,128], index: 1, kind: input, shape index: {}]   ;;  %s1036_s2 = inlined_call_operand.vmem [shape: f32[12,128], index: 2, kind: input, shape index: {}]   ;;  %s1037_s3 = inlined_call_operand.vmem [shape: f32[256,128], index: 3, kind: input, shape index: {}]   ;;  %s1038_s4 = inlined_call_operand.vmem [shape: f32[1,128], index: 4, kind: input, shape index: {}]   ;;  %s1039_s5 = inlined_call_operand.vmem [shape: f32[128,64], index: 5, kind: input, shape index: {}]   ;;  %s1040_s6 = inlined_call_operand.vmem [shape: f32[1,64], index: 6, kind: input, shape index: {}]   ;;  %s1041_s7 = inlined_call_operand.vmem [shape: f32[64,4], index: 7, kind: input, shape index: {}]   ;;  %s1042_s8 = inlined_call_operand.vmem [shape: f32[1,4], index: 8, kind: input, shape index: {}]   ;;  %s1043_s9 = inlined_call_operand.hbm [shape: f32[2,4], index: 9, kind: output, shape index: {}]  }
   0x1   :  { %v164_v0 = vld [vmem:[%s1037_s3 + $0x80] sm:$0xff]  ;;  %v165_v1 = vld [vmem:[%s1037_s3 + $0x88] sm:$0xff]  ;;  %v166_v5 = vld [vmem:[%s1037_s3 + $0x90] sm:$0xff]  ;;  %620 = vmatprep.subr.bf16.mxu1 %v688_v12 }
   0x2   :  { %v148_v2 = vld [vmem:[%s1037_s3] sm:$0xff]  ;;  %v588_v3 = vpack.c.bf16 %v165_v1, %v164_v0  ;;  %v149_v4 = vld [vmem:[%s1037_s3 + $0x8] sm:$0xff]  ;;  %v167_v6 = vld [vmem:[%s1037_s3 + $0x98] sm:$0xff] }
   0x3   :  { %v590_v7 = vpack.c.bf16 %v149_v4, %v148_v2  ;;  %v592_v8 = vpack.c.bf16 %v167_v6, %v166_v5  ;;  %v150_v9 = vld [vmem:[%s1037_s3 + $0x10] sm:$0xff]  ;;  %v151_v10 = vld [vmem:[%s1037_s3 + $0x18] sm:$0xff]  ;;  %v168_v11 = vld [vmem:[%s1037_s3 + $0xa0] sm:$0xff] }
   0x4   :  { %589 = vmatprep.subr.bf16.mxu0 %v588_v3  ;;  %v169_v13 = vld [vmem:[%s1037_s3 + $0xa8] sm:$0xff]  ;;  %v594_v14 = vpack.c.bf16 %v151_v10, %v150_v9  ;;  %v152_v15 = vld [vmem:[%s1037_s3 + $0x20] sm:$0xff]  ;;  %v170_v18 = vld [vmem:[%s1037_s3 + $0xb0] sm:$0xff] }
   0x5   :  { %591 = vmatpush3.bf16.msra.mxu0 %v590_v7  ;;  %v153_v16 = vld [vmem:[%s1037_s3 + $0x28] sm:$0xff]  ;;  %v596_v17 = vpack.c.bf16 %v169_v13, %v168_v11  ;;  %v171_v19 = vld [vmem:[%s1037_s3 + $0xb8] sm:$0xff]  ;;  %v154_v20 = vld [vmem:[%s1037_s3 + $0x30] sm:$0xff] }
   0x6   :  { %593 = vmatprep.subr.bf16.mxu0 %v592_v8  ;;  %v155_v21 = vld [vmem:[%s1037_s3 + $0x38] sm:$0xff]  ;;  %v172_v22 = vld [vmem:[%s1037_s3 + $0xc0] sm:$0xff]  ;;  %v173_v23 = vld [vmem:[%s1037_s3 + $0xc8] sm:$0xff]  ;;  %v598_v27 = vpack.c.bf16 %v153_v16, %v152_v15  ;;  %v600_v31 = vpack.c.bf16 %v171_v19, %v170_v18 }
   0x7   :  { %v800_v24 = vld [vmem:[%s1037_s3 + $0x40] sm:$0xff]  ;;  %v805_v25 = vld [vmem:[%s1037_s3 + $0x48] sm:$0xff]  ;;  %v810_v26 = vld [vmem:[%s1037_s3 + $0xd0] sm:$0xff]  ;;  %v602_v32 = vpack.c.bf16 %v155_v21, %v154_v20  ;;  %v604_v33 = vpack.c.bf16 %v173_v23, %v172_v22 }
   0x8   :  { %v815_v28 = vld [vmem:[%s1037_s3 + $0xd8] sm:$0xff]  ;;  %v820_v29 = vld [vmem:[%s1037_s3 + $0x50] sm:$0xff]  ;;  %v830_v34 = vld [vmem:[%s1037_s3 + $0xe0] sm:$0xff]  ;;  %v606_v37 = vpack.c.bf16 %v805_v25, %v800_v24 }
   0x9   :  { %595 = vmatpush3.bf16.msra.mxu0 %v594_v14  ;;  %v825_v30 = vld [vmem:[%s1037_s3 + $0x58] sm:$0xff]  ;;  %v835_v35 = vld [vmem:[%s1037_s3 + $0xe8] sm:$0xff]  ;;  %v33_v36 = vld [vmem:[%s1034_s0] sm:$0xff]  ;;  %v608_v38 = vpack.c.bf16 %v815_v28, %v810_v26 }
   0xa   :  { %597 = vmatprep.subr.bf16.mxu0 %v596_v17  ;;  %v610_v39 = vpack.c.bf16 %v825_v30, %v820_v29  ;;  %v34_v40 = vrot.slane %v33_v36, 4  ;;  %v49_v41 = vld [vmem:[%s1035_s1] sm:$0x7f]  ;;  %v857_v43 = vld [vmem:[%s1034_s0 + $0x8] sm:$0xff]  ;;  %v612_v54 = vpack.c.bf16 %v835_v35, %v830_v34 }
   0xb   :  { %v852_v42 = vld [vmem:[%s1036_s2] sm:$0x3f]  ;;  %v59_v44 = vsel %vm50_vm0, %v49_v41, 0.0  ;;  %v88_v46 = vrot.slane %v857_v43, 4  ;;  %v866_v47 = vld [vmem:[%s1035_s1 + $0x7] sm:$0x7f] }
   0xc   :  { %v78_v45 = vsel %vm69_vm1, %v852_v42, 0.0  ;;  %v51_v48 = vsel %vm50_vm0, %v49_v41, -inf  ;;  %v42_v49 = vadd.f32 %v34_v40, %v33_v36  ;;  %v60_v50 = vrot.slane %v59_v44, 4  ;;  %v874_v53 = vld [vmem:[%s1036_s2 + $0x6] sm:$0x3f] }
   0xd   :  { %599 = vmatpush3.bf16.msra.mxu0 %v598_v27  ;;  %v79_v51 = vrot.slane %v78_v45, 4  ;;  %v112_v52 = vsel %vm50_vm0, %v866_v47, 0.0  ;;  %v96_v55 = vadd.f32 %v88_v46, %v857_v43  ;;  %v130_v57 = vsel %vm69_vm1, %v874_v53, 0.0  ;;  %v886_v58 = vld [vmem:[%s1037_s3 + $0x60] sm:$0xff]  ;;  %v891_v59 = vld [vmem:[%s1037_s3 + $0x68] sm:$0xff] }
   0xe   :  { %601 = vmatprep.subr.bf16.mxu0 %v600_v31  ;;  %v113_v56 = vrot.slane %v112_v52, 4  ;;  %v43_v60 = vrot.slane %v42_v49, 2  ;;  %v61_v61 = vadd.f32 %v60_v50, %v59_v44  ;;  %v131_v63 = vrot.slane %v130_v57, 4 }
   0xf   :  { %v80_v62 = vadd.f32 %v79_v51, %v78_v45  ;;  %v97_v0 = vrot.slane %v96_v55, 2  ;;  %v35_v2 = vmax.f32 %v33_v36, %v34_v40  ;;  %v52_v3 = vrot.slane %v51_v48, 4 }
  0x10   :  { %v114_v1 = vadd.f32 %v113_v56, %v112_v52  ;;  %v44_v4 = vadd.f32 %v43_v60, %v42_v49  ;;  %v62_v5 = vrot.slane %v61_v61, 2  ;;  %v132_v7 = vadd.f32 %v131_v63, %v130_v57 }
  0x11   :  { %603 = vmatpush3.bf16.msra.mxu0 %v602_v32  ;;  %v81_v6 = vrot.slane %v80_v62, 2 }
  0x12   :  { %605 = vmatprep.subr.bf16.mxu0 %v604_v33 }
  0x13   :  { %14 = vsyncpa [#allocation3], 0  ;;  %v614_v8 = vpack.c.bf16 %v891_v59, %v886_v58  ;;  %v178_v9 = vld [vmem:[%s1037_s3 + $0xf0] sm:$0xff]  ;;  %v98_v10 = vadd.f32 %v97_v0, %v96_v55  ;;  %v115_v11 = vrot.slane %v114_v1, 2  ;;  %v53_v13 = vmax.f32 %v51_v48, %v52_v3  ;;  %v179_v14 = vld [vmem:[%s1037_s3 + $0xf8] sm:$0xff] }
  0x14   :  { %v904_v15 = vld [vmem:[%s1037_s3 + $0x70] sm:$0xff]  ;;  %v909_v16 = vld [vmem:[%s1037_s3 + $0x78] sm:$0xff]  ;;  %v45_v17 = vrot.slane %v44_v4, 1  ;;  %v63_v18 = vadd.f32 %v62_v5, %v61_v61  ;;  %v82_v19 = vadd.f32 %v81_v6, %v80_v62  ;;  %v133_v20 = vrot.slane %v132_v7, 2 }
  0x15   :  { %607 = vmatpush3.bf16.msra.mxu0 %v606_v37  ;;  %v99_v21 = vrot.slane %v98_v10, 1  ;;  %v116_v22 = vadd.f32 %v115_v11, %v114_v1  ;;  %v36_v23 = vrot.slane %v35_v2, 2  ;;  %v54_v24 = vrot.slane %v53_v13, 2  ;;  %v260_v0 = vld [vmem:[%s1039_s5 + $0x10] sm:$0xff]  ;;  %v261_v1 = vld [vmem:[%s1039_s5 + $0x18] sm:$0xff] }
  0x16   :  { %609 = vmatprep.subr.bf16.mxu0 %v608_v38  ;;  %v46_v25 = vadd.f32 %v45_v17, %v44_v4  ;;  %v64_v26 = vrot.slane %v63_v18, 1  ;;  %v83_v27 = vrot.slane %v82_v19, 1  ;;  %v134_v28 = vadd.f32 %v133_v20, %v132_v7  ;;  %v262_v17 = vld [vmem:[%s1039_s5 + $0x20] sm:$0xff] }
  0x17   :  { %v616_v31 = vpack.c.bf16 %v179_v14, %v178_v9  ;;  %v618_v32 = vpack.c.bf16 %v909_v16, %v904_v15  ;;  %v100_v33 = vadd.f32 %v99_v21, %v98_v10  ;;  %v117_v34 = vrot.slane %v116_v22, 1 }
  0x18   :  { %v47_v35 = vmul.f32 0.125, %v46_v25  ;;  %v65_v36 = vadd.f32 %v64_v26, %v63_v18  ;;  %v84_v40 = vadd.f32 %v83_v27, %v82_v19  ;;  %v135_v41 = vrot.slane %v134_v28, 1  ;;  %v263_v18 = vld [vmem:[%s1039_s5 + $0x28] sm:$0xff] }
  0x19   :  { %611 = vmatpush3.bf16.msra.mxu0 %v610_v39  ;;  %v101_v37 = vmul.f32 0.125, %v100_v33  ;;  %v118_v38 = vadd.f32 %v117_v34, %v116_v22  ;;  %v37_v44 = vmax.f32 %v35_v2, %v36_v23  ;;  %v70_v45 = vsel %vm69_vm1, %v852_v42, -inf  ;;  %v258_v42 = vld [vmem:[%s1039_s5] sm:$0xff] }
  0x1a   :  { %613 = vmatprep.subr.bf16.mxu0 %v612_v54  ;;  %v66_v48 = vmul.f32 0.14285715, %v65_v36  ;;  %v136_v49 = vadd.f32 %v135_v41, %v134_v28  ;;  %v55_v50 = vmax.f32 %v53_v13, %v54_v24  ;;  %v71_v51 = vrot.slane %v70_v45, 4  ;;  %v259_v54 = vld [vmem:[%s1039_s5 + $0x8] sm:$0xff]  ;;  %v264_v28 = vld [vmem:[%s1039_s5 + $0x30] sm:$0xff] }
  0x1b   :  { %v85_v52 = vmul.f32 0.16666667, %v84_v40  ;;  %v119_v55 = vmul.f32 0.14285715, %v118_v38  ;;  %v89_v56 = vmax.f32 %v857_v43, %v88_v46  ;;  %v104_v29 = vsel %vm50_vm0, %v866_v47, -inf  ;;  %v266_v40 = vld [vmem:[%s1039_s5 + $0x40] sm:$0xff] }
  0x1c   :  { %v67_v30 = vadd.f32 %v66_v48, %v47_v35  ;;  %v137_v39 = vmul.f32 0.16666667, %v136_v49  ;;  %v72_v57 = vmax.f32 %v70_v45, %v71_v51  ;;  %v105_v58 = vrot.slane %v104_v29, 4  ;;  %v267_v41 = vld [vmem:[%s1039_s5 + $0x48] sm:$0xff]  ;;  %v268_v45 = vld [vmem:[%s1039_s5 + $0x50] sm:$0xff]  ;;  %v269_v48 = vld [vmem:[%s1039_s5 + $0x58] sm:$0xff] }
  0x1d   :  { %615 = vmatpush3.bf16.msra.mxu0 %v614_v8  ;;  %v120_v59 = vadd.f32 %v119_v55, %v101_v37  ;;  %v38_v60 = vrot.slane %v37_v44, 1  ;;  %v90_v61 = vrot.slane %v89_v56, 2  ;;  %v122_v43 = vsel %vm69_vm1, %v874_v53, -inf  ;;  %v271_v51 = vld [vmem:[%s1039_s5 + $0x68] sm:$0xff]  ;;  %v272_v55 = vld [vmem:[%s1039_s5 + $0x70] sm:$0xff] }
  0x1e   :  { %617 = vmatprep.subr.bf16.mxu0 %v616_v31  ;;  %v56_v46 = vrot.slane %v55_v50, 1  ;;  %v73_v47 = vrot.slane %v72_v57, 2  ;;  %v106_v62 = vmax.f32 %v104_v29, %v105_v58  ;;  %v123_v63 = vrot.slane %v122_v43, 4  ;;  %v265_v31 = vld [vmem:[%s1039_s5 + $0x38] sm:$0xff]  ;;  %v354_v58 = vld [vmem:[%s1041_s7 + $0x10] sm:$0xff] }
  0x1f   :  { %v86_v2 = vadd.f32 %v85_v52, %v67_v30  ;;  %v138_v3 = vadd.f32 %v137_v39, %v120_v59  ;;  %v91_v4 = vmax.f32 %v89_v56, %v90_v61  ;;  %v621_v5 = vpack.c.bf16 %v259_v54, %v258_v42  ;;  %v273_v56 = vld [vmem:[%s1039_s5 + $0x78] sm:$0xff]  ;;  %v352_v39 = vld [vmem:[%s1041_s7] sm:$0xff]  ;;  %v357_v61 = vld [vmem:[%s1041_s7 + $0x28] sm:$0xff] }
  0x20   :  { %vm145_vm2 = vcmask 1040384   ;;  %v74_v6 = vmax.f32 %v72_v57, %v73_v47  ;;  %v107_v53 = vrot.slane %v106_v62, 2  ;;  %v124_v7 = vmax.f32 %v122_v43, %v123_v63  ;;  %v353_v57 = vld [vmem:[%s1041_s7 + $0x8] sm:$0xff]  ;;  %v355_v54 = vld [vmem:[%s1041_s7 + $0x18] sm:$0xff]  ;;  %v469_v47 = vld [vmem:[%s1038_s4] ss:$0 sm:$0xff] }
  0x21   :  { %619 = vmatpush3.bf16.msra.mxu0 %v618_v32  ;;  %v142_v8 = vrot.slane %v138_v3, 7  ;;  %v39_v9 = vmax.f32 %v37_v44, %v38_v60  ;;  %v92_v10 = vrot.slane %v91_v4, 1  ;;  %622 = vmatpush3.bf16.msra.mxu1 %v621_v5  ;;  %v624_v11 = vpack.c.bf16 %v261_v1, %v260_v0  ;;  %v356_v60 = vld [vmem:[%s1041_s7 + $0x20] sm:$0xff]  ;;  %v359_v3 = vld [vmem:[%s1041_s7 + $0x38] sm:$0xff] }
  0x22   :  { %v57_v13 = vmax.f32 %v55_v50, %v56_v46  ;;  %v75_v14 = vrot.slane %v74_v6, 1  ;;  %v108_v15 = vmax.f32 %v106_v62, %v107_v53  ;;  %v125_v16 = vrot.slane %v124_v7, 2  ;;  %623 = vmatprep.subr.bf16.mxu1 %v688_v12  ;;  %644 = vmatprep.subr.bf16.mxu0 %v688_v12  ;;  %v270_v50 = vld [vmem:[%s1039_s5 + $0x60] sm:$0xff] }
  0x23   :  { %v147_v19 = vsel %vm145_vm2, %v86_v2, %v142_v8  ;;  %v93_v20 = vmax.f32 %v91_v4, %v92_v10  ;;  %v627_v23 = vpack.c.bf16 %v263_v18, %v262_v17  ;;  %v630_v34 = vpack.c.bf16 %v265_v31, %v264_v28  ;;  %v358_v2 = vld [vmem:[%s1041_s7 + $0x30] sm:$0xff]  ;;  %v471_v8 = vld [vmem:[%s1042_s8] ss:$0 sm:$0xff] }
  0x24   :  { %251 = vmatprep.mubr.f32.mxu0 %v147_v19  ;;  %v109_v21 = vrot.slane %v108_v15, 1  ;;  %v126_v22 = vmax.f32 %v124_v7, %v125_v16  ;;  %v58_v24 = vadd.f32 %v57_v13, %v39_v9  ;;  %v76_v25 = vmax.f32 %v74_v6, %v75_v14 }
  0x25   :  { %625 = vmatpush3.bf16.msra.mxu1 %v624_v11  ;;  %v633_v38 = vpack.c.bf16 %v267_v41, %v266_v40  ;;  %v636_v49 = vpack.c.bf16 %v269_v48, %v268_v45  ;;  %v639_v52 = vpack.c.bf16 %v271_v51, %v270_v50  ;;  %v642_v29 = vpack.c.bf16 %v273_v56, %v272_v55 }
  0x26   :  { %v110_v26 = vmax.f32 %v108_v15, %v109_v21  ;;  %v127_v27 = vrot.slane %v126_v22, 1  ;;  %626 = vmatprep.subr.bf16.mxu1 %v688_v12  ;;  %v77_v35 = vadd.f32 %v76_v25, %v58_v24  ;;  %vm689_vm3 = vmmov 0  }
  0x27   :  { %v690_v30 = vmov 0.0   ;;  %v645_v42 = vpack.c.bf16 %v353_v57, %v352_v39  ;;  %v648_v59 = vpack.c.bf16 %v355_v54, %v354_v58  ;;  %v651_v43 = vpack.c.bf16 %v357_v61, %v356_v60 }
  0x28   :  { %v111_v32 = vadd.f32 %v110_v26, %v93_v20  ;;  %v128_v33 = vmax.f32 %v126_v22, %v127_v27  ;;  %566 = vmatprep.mubr.msk.f32.mxu1 %vm689_vm3, %v690_v30  ;;  %v654_v4 = vpack.c.bf16 %v359_v3, %v358_v2  ;;  %vm367_vm4 = vcmask 523264  }
  0x29   :  { %628 = vmatpush3.bf16.msra.mxu1 %v627_v23  ;;  %vm441_vm5 = vcmask 25600  }
  0x2a   :  { %v129_v36 = vadd.f32 %v128_v33, %v111_v32  ;;  %629 = vmatprep.subr.bf16.mxu1 %v688_v12 }
  0x2c   :  { %v141_v37 = vrot.slane %v129_v36, 7 }
  0x2d   :  { %631 = vmatpush3.bf16.msra.mxu1 %v630_v34 }
  0x2e   :  { %v146_v44 = vsel %vm145_vm2, %v77_v35, %v141_v37  ;;  %632 = vmatprep.subr.bf16.mxu1 %v688_v12 }
  0x2f   :  { %252 = vmatmul.mubr.f32.vlgmr.msra.gmra.mrb[0].mxu0 %v146_v44 }
  0x30   :  { %585 = vmatprep.mubr.msk.f32.mxu0 %vm689_vm3, %v690_v30  ;;  %646 = vmatpush3.bf16.msra.mxu0 %v645_v42 }
  0x31   :  { %634 = vmatpush3.bf16.msra.mxu1 %v633_v38  ;;  %647 = vmatprep.subr.bf16.mxu0 %v688_v12 }
  0x32   :  { %635 = vmatprep.subr.bf16.mxu1 %v688_v12 }
  0x34   :  { %649 = vmatpush3.bf16.msra.mxu0 %v648_v59 }
  0x35   :  { %637 = vmatpush3.bf16.msra.mxu1 %v636_v49  ;;  %650 = vmatprep.subr.bf16.mxu0 %v688_v12 }
  0x36   :  { %638 = vmatprep.subr.bf16.mxu1 %v688_v12 }
  0x38   :  { %652 = vmatpush3.bf16.msra.mxu0 %v651_v43 }
  0x39   :  { %640 = vmatpush3.bf16.msra.mxu1 %v639_v52  ;;  %653 = vmatprep.subr.bf16.mxu0 %v688_v12 }
  0x3a   :  { %641 = vmatprep.subr.bf16.mxu1 %v688_v12  ;;  %v470_v12 = vld [vmem:[%s1040_s6] ss:$0 sm:$0xff]  ;;  %s691_s6 = smov [#allocation2]  }
  0x3b   :  { %s461_s7 = sshll.u32 %s691_s6, 4  ;;  %s462_s7 = int_to_ptr.vmem [resolvable:$true] %s461_s7 }
  0x3c   :  { %655 = vmatpush3.bf16.msra.mxu0 %v654_v4  ;;  %s664_s8 = scalar_lea.vmem %s462_s7, 32  ;;  %p669_p1 = scmp.lt.s32.totalorder %s462_s7, %s462_s7 }
  0x3d   :  { %643 = vmatpush3.bf16.msra.mxu1 %v642_v29  ;;  %p665_p0 = scmp.ne.s32.totalorder %s462_s7, %s664_s8  ;;  %p670_p2 = scmp.lt.s32.totalorder %s664_s8, %s664_s8 }
  0x3f   :  { %p671_p3 = por %p670_p2, %p669_p1 }
  0x41   :  { %p672_p4 = pnand %p671_p3, %p665_p0 }
 0x102   :  { %v505_v46 = vpop.f32.mrb[0].mxu0 }
 0x103   :  { %v506_v62 = vpop.f32.mrb[1].mxu0 }
 0x104   :  { %v507_v63 = vadd.f32 %v506_v62, %v505_v46 }
 0x106   :  { %v254_v0 = vadd.f32 %v507_v63, %v469_v47 }
 0x108   :  { %v257_v1 = vmax.f32 %v254_v0, 0.0 }
 0x10a   :  { %567 = vmatmul.mubr.f32.vlgmr.msra.gmra.mrb[0].mxu1 %v257_v1 }
 0x1dd   :  { %v347_v5 = vpop.f32.mrb[0].mxu1 }
 0x1de   :  { %v348_v6 = vadd.f32 %v470_v12, %v347_v5  ;;  %v568_v53 = vpop.f32.mrb[1].mxu1 }
 0x1e0   :  { %v351_v7 = vmax.f32 %v348_v6, 0.0 }
 0x1e2   :  { %586 = vmatmul.mubr.msk.f32.vlgmr.msra.gmra.mrb[2].mxu0 %vm367_vm4, %v351_v7 }
 0x2b5   :  { %v437_v9 = vpop.f32.mrb[2].mxu0 }
 0x2b6   :  { %v438_v10 = vadd.f32 %v471_v8, %v437_v9  ;;  %v587_v11 = vpop.f32.mrb[3].mxu0 }
 0x2b8   :  { %v442_v13 = vsel %vm441_vm5, %v438_v10, -inf }
 0x2b9   :  { %443 = vmax.xlane.f32.xlu0 %v442_v13 }
 0x346   :  { %v444_v14 = vpop.xlane.xlu0 %443 }
 0x347   :  { %v445_v15 = vsub.f32 %v438_v10, %v444_v14 }
 0x349   :  { %v446_v16 = vmul.f32 1.442695, %v445_v15 }
 0x34b   :  { %660 = vpow2.f32 %v446_v16 }
 0x355   :  { %v661_v17 = vpop.eup %660 }
 0x356   :  { %v448_v18 = vsel %vm441_vm5, %v661_v17, 0.0 }
 0x357   :  { %449 = vadd.xlane.f32.xlu0 %v448_v18 }
 0x3e4   :  { %v450_v19 = vpop.xlane.xlu0 %449 }
 0x3e5   :  { %662 = vlog2.f32 %v450_v19 }
 0x3ef   :  { %v663_v20 = vpop.eup %662 }
 0x3f0   :  { %v452_v21 = vmul.f32 0.6931472, %v663_v20 }
 0x3f2   :  { %v453_v22 = vsub.f32 %v445_v15, %v452_v21 }
 0x3f4   :  { %454 = vst.msk [vmem:[#allocation2] sm:$0x3] %vm441_vm5, %v453_v22 }
 0x3f5   :  { %675 = shalt.err (!%p672_p4)
}
 0x3f6   :  { %s676_s22 = scalar_lea.hbm %s1043_s9, 32 }
 0x3f7   :  { %p677_p5 = scmp.ne.s32.totalorder %s1043_s9, %s676_s22  ;;  %p680_p6 = scmp.lt.u32.totalorder %s676_s22, %s1043_s9 }
 0x3f9   :  { %p682_p7 = pnand %p680_p6, %p677_p5 }
 0x3fb   :  { %685 = shalt.err (!%p682_p7)
}
 0x3fc   :  { %464 = dma.vmem_to_hbm [thread:$0]  %s462_s7, 32, %s1043_s9, [#allocation3]  }
 0x3fd   :  { %686 = dma.done.wait [#allocation3], 32  }
 0x3fe   :  { %687 = vsyncadd [#allocation3], 4294967264 }
 0x3ff   :  { %468 = vsyncpa [#allocation3], 1 }

</bundles_post_ra>
